<compile_context>
chip_gen: v7x
topology: tpu7x:2x2x1
jax: 0.10.0
libtpu: 0.0.40
codegen_flags: <defaults>
</compile_context>

<pallas_src>
import numpy as np
import jax
import jax.numpy as jnp
from jax.experimental import pallas as pl
from jax.experimental.pallas import tpu as pltpu

VOCAB = 10         # input_size  (nn.Embedding num_embeddings)
HIDDEN = 20        # hidden_size
NUM_LAYERS = 1

H_PAD = 128        # hidden padded to one full lane width (gate k at cols [k*H_PAD, k*H_PAD+H))
B_TILE = 8         # sublane-dense batch tile (one tile per grid step along batch)
T_CHUNK_MAX = 64   # time steps per pipelined chunk


def _round_up(x, m):
    return (x + m - 1) // m * m


# ----------------------------------------------------------------------------
# Pallas kernel: one (batch-tile, time-chunk) grid step of the LSTM recurrence.
#   xproj_ref : (TC, B_TILE, 4*H_PAD)  precomputed token->gate projection chunk
#   len_ref   : (B_TILE, 1) int32      per-sequence lengths (0 for padded rows)
#   whh_ref   : (H_PAD, 4*H_PAD)       fused recurrent weights (constant block)
#   out_ref   : (TC, B_TILE, H_PAD)    time-major outputs for this chunk
#   h_ref/c_ref: (B_TILE, H_PAD)       running hidden / cell state; VMEM-resident
#                                      across the time axis (same block index);
#                                      doubles as the final-state output.
# ----------------------------------------------------------------------------
def lstm_seq_kernel(xproj_ref, len_ref, whh_ref, out_ref, h_ref, c_ref):
    tchunk = pl.program_id(1)
    TC = out_ref.shape[0]
    HP = h_ref.shape[1]

    @pl.when(tchunk == 0)
    def _init():
        h_ref[...] = jnp.zeros_like(h_ref)
        c_ref[...] = jnp.zeros_like(c_ref)

    len_vec = len_ref[...]                 # (B_TILE, 1) int32, read once per chunk
    t_base = tchunk * TC

    def step(tt, carry):
        h, c = carry                       # state carried in vregs, not refs
        # Fused gates: hoisted (table-gathered) input projection + one recurrent matmul.
        gates = xproj_ref[tt] + jnp.dot(h, whh_ref[...],
                                        preferred_element_type=jnp.float32)
        # PyTorch gate order i, f, g, o; each gate occupies a lane-aligned
        # 128-wide block so slicing needs no cross-lane relayout.
        i_g = jax.nn.sigmoid(gates[:, 0 * HP:1 * HP])
        f_g = jax.nn.sigmoid(gates[:, 1 * HP:2 * HP])
        g_g = jnp.tanh(gates[:, 2 * HP:3 * HP])
        o_g = jax.nn.sigmoid(gates[:, 3 * HP:4 * HP])

        c_new = f_g * c + i_g * g_g
        h_new = o_g * jnp.tanh(c_new)

        m = (t_base + tt) < len_vec        # (B_TILE, 1) bool: t < src_length[b]
        h = jnp.where(m, h_new, h)         # hold state after sequence end
        c = jnp.where(m, c_new, c)
        out_ref[tt] = jnp.where(m, h_new, 0.0)   # padded positions stay zero
        return (h, c)

    h_fin, c_fin = jax.lax.fori_loop(
        0, TC, step, (h_ref[...], c_ref[...]), unroll=min(TC, 8))
    h_ref[...] = h_fin                     # state refs written once per chunk
    c_ref[...] = c_fin


def run_lstm_pallas(x_proj, lengths, w_hh_pad, t_chunk):
    T_pad, BP, G = x_proj.shape
    HP = G // 4
    grid = (BP // B_TILE, T_pad // t_chunk)
    return pl.pallas_call(
        lstm_seq_kernel,
        out_shape=(
            jax.ShapeDtypeStruct((T_pad, BP, HP), jnp.float32),   # time-major outputs
            jax.ShapeDtypeStruct((BP, HP), jnp.float32),          # final hidden
            jax.ShapeDtypeStruct((BP, HP), jnp.float32),          # final cell
        ),
        grid_spec=pltpu.PrefetchScalarGridSpec(
            num_scalar_prefetch=0,
            grid=grid,
            in_specs=[
                pl.BlockSpec((t_chunk, B_TILE, G), lambda b, t: (t, b, 0)),
                pl.BlockSpec((B_TILE, 1), lambda b, t: (b, 0)),
                pl.BlockSpec((HP, G), lambda b, t: (0, 0)),       # constant -> fetched once
            ],
            out_specs=(
                pl.BlockSpec((t_chunk, B_TILE, HP), lambda b, t: (t, b, 0)),
                pl.BlockSpec((B_TILE, HP), lambda b, t: (b, 0)),  # resident across time axis
                pl.BlockSpec((B_TILE, HP), lambda b, t: (b, 0)),
            ),
        ),
        compiler_params=pltpu.CompilerParams(
            dimension_semantics=("parallel", "arbitrary"),
            vmem_limit_bytes=32 * 1024 * 1024,
        ),
    )(x_proj, lengths, w_hh_pad)


# ----------------------------------------------------------------------------
# Encoder forward: table-gathered input projection in plain XLA, the serial
# recurrence in a time-chunked Pallas pipeline.
# ----------------------------------------------------------------------------
def encoder_forward(src, src_length, params):
    # src: (T, B) int32 token ids, time-major.  src_length: host (B,) int.
    T, B = src.shape
    BP = _round_up(B, B_TILE)                 # sublane-dense batch
    t_chunk = min(T, T_CHUNK_MAX)
    T_pad = _round_up(T, t_chunk)

    # Embedding + dropout(eval=identity) + x @ W_ih + b folded into one table
    # gather: (T_pad, BP) int32 -> (T_pad, BP, 4*H_PAD).  Padded rows/steps use
    # token 0 (finite values); the in-kernel length mask keeps their state/out 0.
    src_pad = jnp.zeros((T_pad, BP), jnp.int32).at[:T, :B].set(src)
    x_proj = jnp.take(params["emb_proj_table"], src_pad, axis=0)

    lengths = jnp.zeros((BP, 1), jnp.int32).at[:B, 0].set(
        jnp.asarray(src_length, dtype=jnp.int32))

    out_tm, h_last, c_last = run_lstm_pallas(x_proj, lengths,
                                             params["w_hh_pad"], t_chunk)

    max_len = int(np.max(np.asarray(src_length)))
    # Slice to the valid region first; only the tiny (max_len, B, H) view is transposed.
    outputs = jnp.transpose(out_tm[:max_len, :B, :HIDDEN], (1, 0, 2))  # (B, max_len, H)
    hidden = h_last[None, :B, :HIDDEN]                                  # (1, B, H)
    cell = c_last[None, :B, :HIDDEN]                                    # (1, B, H)
    return hidden, cell, outputs


# ----------------------------------------------------------------------------
# Pure-JAX reference (lax.scan, unpadded, per-gate weights) for correctness.
# ----------------------------------------------------------------------------
def encoder_reference(src, src_length, params):
    emb = jnp.take(params["embedding"], src, axis=0).astype(jnp.float32)
    T, B, H = emb.shape
    lengths = jnp.asarray(src_length, dtype=jnp.int32)
    mask = (jnp.arange(T)[:, None] < lengths[None, :]).astype(jnp.float32)[..., None]
    wih, whh, b = params["w_ih"], params["w_hh"], params["bias"]

    def step(carry, inp):
        h, c = carry
        x, m = inp
        gates = [x @ wih[k] + h @ whh[k] + b[k] for k in range(4)]
        i_g = jax.nn.sigmoid(gates[0]); f_g = jax.nn.sigmoid(gates[1])
        g_g = jnp.tanh(gates[2]);       o_g = jax.nn.sigmoid(gates[3])
        c_new = f_g * c + i_g * g_g
        h_new = o_g * jnp.tanh(c_new)
        h2 = m * h_new + (1 - m) * h
        c2 = m * c_new + (1 - m) * c
        return (h2, c2), m * h_new

    h0 = jnp.zeros((B, H), jnp.float32)
    c0 = jnp.zeros((B, H), jnp.float32)
    (hT, cT), outs = jax.lax.scan(step, (h0, c0), (emb, mask))
    max_len = int(np.max(np.asarray(src_length)))
    return hT[None], cT[None], jnp.transpose(outs, (1, 0, 2))[:, :max_len]


# ----------------------------------------------------------------------------
# Deterministic parameter init (matches module shapes; synthetic values).
# ----------------------------------------------------------------------------
def init_params(key, vocab, hidden):
    k_emb, k_wih, k_whh, k_bih, k_bhh = jax.random.split(key, 5)
    bound = 1.0 / np.sqrt(hidden)
    embedding = jax.random.normal(k_emb, (vocab, hidden), jnp.float32)
    # PyTorch weight_ih_l0 is (4H, H); stored transposed per gate: (4, H, H).
    w_ih = jax.random.uniform(k_wih, (4, hidden, hidden), jnp.float32, -bound, bound)
    w_hh = jax.random.uniform(k_whh, (4, hidden, hidden), jnp.float32, -bound, bound)
    b_ih = jax.random.uniform(k_bih, (4, 1, hidden), jnp.float32, -bound, bound)
    b_hh = jax.random.uniform(k_bhh, (4, 1, hidden), jnp.float32, -bound, bound)
    bias = b_ih + b_hh

    # Folded Embedding + input projection table (dropout is eval identity, so
    # the fold is exact): row v holds  embedding[v] @ W_ih_k + bias_k  in the
    # lane-aligned block of gate k.  Padded columns stay exactly 0, which keeps
    # the padded state lanes at 0 throughout the recurrence.
    emb_proj_table = jnp.zeros((vocab, 4 * H_PAD), jnp.float32)
    w_hh_pad = jnp.zeros((H_PAD, 4 * H_PAD), jnp.float32)
    for k in range(4):
        emb_proj_table = emb_proj_table.at[:, k * H_PAD:k * H_PAD + hidden].set(
            embedding @ w_ih[k] + bias[k, 0])
        w_hh_pad = w_hh_pad.at[:hidden, k * H_PAD:k * H_PAD + hidden].set(w_hh[k])

    return {"embedding": embedding, "w_ih": w_ih, "w_hh": w_hh, "bias": bias,
            "emb_proj_table": emb_proj_table, "w_hh_pad": w_hh_pad}


if __name__ == "__main__":
    T, B = 8, 2                     # seq_len=8, batch=2
    key = jax.random.PRNGKey(0)
    k_params, k_src = jax.random.split(key)

    params = init_params(k_params, VOCAB, HIDDEN)
    src = jax.random.randint(k_src, (T, B), 0, VOCAB, dtype=jnp.int32)   # (T, B)
    src_length = np.array([8, 5], dtype=np.int32)                        # variable lengths

    hidden, cell, outputs = encoder_forward(src, src_length, params)
    jax.block_until_ready((hidden, cell, outputs))

    # Sanity check against pure-JAX reference.
    h_ref, c_ref, o_ref = encoder_reference(src, src_length, params)
    np.testing.assert_allclose(np.asarray(hidden), np.asarray(h_ref), rtol=1e-4, atol=1e-4)
    np.testing.assert_allclose(np.asarray(cell),   np.asarray(c_ref), rtol=1e-4, atol=1e-4)
    np.testing.assert_allclose(np.asarray(outputs), np.asarray(o_ref), rtol=1e-4, atol=1e-4)

    assert hidden.shape == (NUM_LAYERS, B, HIDDEN)
    assert cell.shape == (NUM_LAYERS, B, HIDDEN)
    assert outputs.shape == (B, int(np.max(src_length)), HIDDEN)

    print("KERNEL_OK")
</pallas_src>

<mosaic_0001>
module attributes {stable_mosaic.version = 11 : i64} {
  func.func @lstm_seq_kernel(%arg0: i32, %arg1: i32, %arg2: memref<8x8x512xf32, #tpu.memory_space<vmem>>, %arg3: memref<8x1xi32, #tpu.memory_space<vmem>>, %arg4: memref<128x512xf32, #tpu.memory_space<vmem>>, %arg5: memref<8x8x128xf32, #tpu.memory_space<vmem>>, %arg6: memref<8x128xf32, #tpu.memory_space<vmem>>, %arg7: memref<8x128xf32, #tpu.memory_space<vmem>>) attributes {dimension_semantics = [#tpu.dimension_semantics<parallel>, #tpu.dimension_semantics<arbitrary>], iteration_bounds = array<i64: 1, 1>, scalar_prefetch = 0 : i64, scratch_operands = 0 : i64, tpu.core_type = #tpu.core_type<tc>, window_params = [{transform_indices = @transform_0, window_bounds = array<i64: 8, 8, 512>}, {transform_indices = @transform_1, window_bounds = array<i64: 8, 1>}, {pipeline_mode = #tpu.pipeline_mode<synchronous>, transform_indices = @transform_2, window_bounds = array<i64: 128, 512>}, {transform_indices = @transform_3, window_bounds = array<i64: 8, 8, 128>}, {transform_indices = @transform_4, window_bounds = array<i64: 8, 128>}, {transform_indices = @transform_5, window_bounds = array<i64: 8, 128>}]} {
    %c0_i32 = arith.constant 0 : i32
    %0 = arith.cmpi eq, %arg1, %c0_i32 : i32
    %1 = arith.extui %0 : i1 to i32
    %c0_i32_0 = arith.constant 0 : i32
    %2 = arith.cmpi ne, %1, %c0_i32_0 : i32
    scf.if %2 {
      %cst_99 = arith.constant 0.000000e+00 : f32
      %393 = vector.broadcast %cst_99 : f32 to vector<8x128xf32>
      %c0_100 = arith.constant 0 : index
      %c0_101 = arith.constant 0 : index
      %394 = vector.load %arg6[%c0_100, %c0_101] : memref<8x128xf32, #tpu.memory_space<vmem>>, vector<8x128xf32>
      tpu.vector_store %arg6[%c0_100, %c0_101], %393 {strides = array<i32>} : memref<8x128xf32, #tpu.memory_space<vmem>>, vector<8x128xf32>,
      %cst_102 = arith.constant 0.000000e+00 : f32
      %395 = vector.broadcast %cst_102 : f32 to vector<8x128xf32>
      %c0_103 = arith.constant 0 : index
      %c0_104 = arith.constant 0 : index
      %396 = vector.load %arg7[%c0_103, %c0_104] : memref<8x128xf32, #tpu.memory_space<vmem>>, vector<8x128xf32>
      tpu.vector_store %arg7[%c0_103, %c0_104], %395 {strides = array<i32>} : memref<8x128xf32, #tpu.memory_space<vmem>>, vector<8x128xf32>,
    } else {
    }
    %c0 = arith.constant 0 : index
    %c0_1 = arith.constant 0 : index
    %3 = vector.load %arg3[%c0, %c0_1] : memref<8x1xi32, #tpu.memory_space<vmem>>, vector<8x1xi32>
    %c8_i32 = arith.constant 8 : i32
    %4 = arith.muli %arg1, %c8_i32 : i32
    %c0_2 = arith.constant 0 : index
    %c0_3 = arith.constant 0 : index
    %5 = vector.load %arg6[%c0_2, %c0_3] : memref<8x128xf32, #tpu.memory_space<vmem>>, vector<8x128xf32>
    %c0_4 = arith.constant 0 : index
    %c0_5 = arith.constant 0 : index
    %6 = vector.load %arg7[%c0_4, %c0_5] : memref<8x128xf32, #tpu.memory_space<vmem>>, vector<8x128xf32>
    %c0_i32_6 = arith.constant 0 : i32
    %7 = arith.index_cast %c0_i32_6 : i32 to index
    %c0_7 = arith.constant 0 : index
    %c0_8 = arith.constant 0 : index
    %8 = vector.load %arg2[%7, %c0_7, %c0_8] : memref<8x8x512xf32, #tpu.memory_space<vmem>>, vector<1x8x512xf32>
    %9 = vector.shape_cast %8 : vector<1x8x512xf32> to vector<8x512xf32>
    %c0_9 = arith.constant 0 : index
    %c0_10 = arith.constant 0 : index
    %10 = vector.load %arg4[%c0_9, %c0_10] : memref<128x512xf32, #tpu.memory_space<vmem>>, vector<128x512xf32>
    %cst = arith.constant dense<0.000000e+00> : vector<8x512xf32>
    %11 = tpu.matmul %5, %10, %cst {dimension_numbers = #tpu.dot_dimension_numbers<[1], [0], [0], [1], [0, 0, 1, 1], [], []>} : vector<8x128xf32>, vector<128x512xf32>, vector<8x512xf32> -> vector<8x512xf32>
    %12 = arith.addf %9, %11 : vector<8x512xf32>
    %13 = vector.extract_strided_slice %12 {offsets = [0, 0], sizes = [8, 128], strides = [1, 1]} : vector<8x512xf32> to vector<8x128xf32>
    %14 = arith.negf %13 : vector<8x128xf32>
    %15 = math.exp %14 : vector<8x128xf32>
    %cst_11 = arith.constant 1.000000e+00 : f32
    %16 = vector.broadcast %cst_11 : f32 to vector<8x128xf32>
    %17 = arith.addf %16, %15 : vector<8x128xf32>
    %18 = arith.divf %16, %17 : vector<8x128xf32>
    %19 = vector.extract_strided_slice %12 {offsets = [0, 128], sizes = [8, 128], strides = [1, 1]} : vector<8x512xf32> to vector<8x128xf32>
    %20 = arith.negf %19 : vector<8x128xf32>
    %21 = math.exp %20 : vector<8x128xf32>
    %cst_12 = arith.constant 1.000000e+00 : f32
    %22 = vector.broadcast %cst_12 : f32 to vector<8x128xf32>
    %23 = arith.addf %22, %21 : vector<8x128xf32>
    %24 = arith.divf %22, %23 : vector<8x128xf32>
    %25 = vector.extract_strided_slice %12 {offsets = [0, 256], sizes = [8, 128], strides = [1, 1]} : vector<8x512xf32> to vector<8x128xf32>
    %26 = math.tanh %25 : vector<8x128xf32>
    %27 = vector.extract_strided_slice %12 {offsets = [0, 384], sizes = [8, 128], strides = [1, 1]} : vector<8x512xf32> to vector<8x128xf32>
    %28 = arith.negf %27 : vector<8x128xf32>
    %29 = math.exp %28 : vector<8x128xf32>
    %cst_13 = arith.constant 1.000000e+00 : f32
    %30 = vector.broadcast %cst_13 : f32 to vector<8x128xf32>
    %31 = arith.addf %30, %29 : vector<8x128xf32>
    %32 = arith.divf %30, %31 : vector<8x128xf32>
    %33 = arith.mulf %24, %6 : vector<8x128xf32>
    %34 = arith.mulf %18, %26 : vector<8x128xf32>
    %35 = arith.addf %33, %34 : vector<8x128xf32>
    %36 = math.tanh %35 : vector<8x128xf32>
    %37 = arith.mulf %32, %36 : vector<8x128xf32>
    %38 = arith.addi %4, %c0_i32_6 : i32
    %39 = vector.broadcast %38 : i32 to vector<8x1xi32>
    %40 = arith.cmpi slt, %39, %3 : vector<8x1xi32>
    %41 = vector.shape_cast %40 : vector<8x1xi1> to vector<8x1xi1>
    %42 = vector.broadcast %41 : vector<8x1xi1> to vector<8x128xi1>
    %43 = arith.select %42, %37, %5 : vector<8x128xi1>, vector<8x128xf32>
    %44 = vector.shape_cast %40 : vector<8x1xi1> to vector<8x1xi1>
    %45 = vector.broadcast %44 : vector<8x1xi1> to vector<8x128xi1>
    %46 = arith.select %45, %35, %6 : vector<8x128xi1>, vector<8x128xf32>
    %cst_14 = arith.constant 0.000000e+00 : f32
    %47 = vector.shape_cast %40 : vector<8x1xi1> to vector<8x1xi1>
    %48 = vector.broadcast %47 : vector<8x1xi1> to vector<8x128xi1>
    %49 = vector.broadcast %cst_14 : f32 to vector<8x128xf32>
    %50 = arith.select %48, %37, %49 : vector<8x128xi1>, vector<8x128xf32>
    %51 = arith.index_cast %c0_i32_6 : i32 to index
    %c0_15 = arith.constant 0 : index
    %c0_16 = arith.constant 0 : index
    %52 = vector.load %arg5[%51, %c0_15, %c0_16] : memref<8x8x128xf32, #tpu.memory_space<vmem>>, vector<1x8x128xf32>
    %53 = vector.shape_cast %52 : vector<1x8x128xf32> to vector<8x128xf32>
    %54 = vector.shape_cast %50 : vector<8x128xf32> to vector<1x8x128xf32>
    tpu.vector_store %arg5[%51, %c0_15, %c0_16], %54 {strides = array<i32>} : memref<8x8x128xf32, #tpu.memory_space<vmem>>, vector<1x8x128xf32>,
    %c1_i32 = arith.constant 1 : i32
    %55 = arith.index_cast %c1_i32 : i32 to index
    %c0_17 = arith.constant 0 : index
    %c0_18 = arith.constant 0 : index
    %56 = vector.load %arg2[%55, %c0_17, %c0_18] : memref<8x8x512xf32, #tpu.memory_space<vmem>>, vector<1x8x512xf32>
    %57 = vector.shape_cast %56 : vector<1x8x512xf32> to vector<8x512xf32>
    %c0_19 = arith.constant 0 : index
    %c0_20 = arith.constant 0 : index
    %58 = vector.load %arg4[%c0_19, %c0_20] : memref<128x512xf32, #tpu.memory_space<vmem>>, vector<128x512xf32>
    %cst_21 = arith.constant dense<0.000000e+00> : vector<8x512xf32>
    %59 = tpu.matmul %43, %58, %cst_21 {dimension_numbers = #tpu.dot_dimension_numbers<[1], [0], [0], [1], [0, 0, 1, 1], [], []>} : vector<8x128xf32>, vector<128x512xf32>, vector<8x512xf32> -> vector<8x512xf32>
    %60 = arith.addf %57, %59 : vector<8x512xf32>
    %61 = vector.extract_strided_slice %60 {offsets = [0, 0], sizes = [8, 128], strides = [1, 1]} : vector<8x512xf32> to vector<8x128xf32>
    %62 = arith.negf %61 : vector<8x128xf32>
    %63 = math.exp %62 : vector<8x128xf32>
    %cst_22 = arith.constant 1.000000e+00 : f32
    %64 = vector.broadcast %cst_22 : f32 to vector<8x128xf32>
    %65 = arith.addf %64, %63 : vector<8x128xf32>
    %66 = arith.divf %64, %65 : vector<8x128xf32>
    %67 = vector.extract_strided_slice %60 {offsets = [0, 128], sizes = [8, 128], strides = [1, 1]} : vector<8x512xf32> to vector<8x128xf32>
    %68 = arith.negf %67 : vector<8x128xf32>
    %69 = math.exp %68 : vector<8x128xf32>
    %cst_23 = arith.constant 1.000000e+00 : f32
    %70 = vector.broadcast %cst_23 : f32 to vector<8x128xf32>
    %71 = arith.addf %70, %69 : vector<8x128xf32>
    %72 = arith.divf %70, %71 : vector<8x128xf32>
    %73 = vector.extract_strided_slice %60 {offsets = [0, 256], sizes = [8, 128], strides = [1, 1]} : vector<8x512xf32> to vector<8x128xf32>
    %74 = math.tanh %73 : vector<8x128xf32>
    %75 = vector.extract_strided_slice %60 {offsets = [0, 384], sizes = [8, 128], strides = [1, 1]} : vector<8x512xf32> to vector<8x128xf32>
    %76 = arith.negf %75 : vector<8x128xf32>
    %77 = math.exp %76 : vector<8x128xf32>
    %cst_24 = arith.constant 1.000000e+00 : f32
    %78 = vector.broadcast %cst_24 : f32 to vector<8x128xf32>
    %79 = arith.addf %78, %77 : vector<8x128xf32>
    %80 = arith.divf %78, %79 : vector<8x128xf32>
    %81 = arith.mulf %72, %46 : vector<8x128xf32>
    %82 = arith.mulf %66, %74 : vector<8x128xf32>
    %83 = arith.addf %81, %82 : vector<8x128xf32>
    %84 = math.tanh %83 : vector<8x128xf32>
    %85 = arith.mulf %80, %84 : vector<8x128xf32>
    %86 = arith.addi %4, %c1_i32 : i32
    %87 = vector.broadcast %86 : i32 to vector<8x1xi32>
    %88 = arith.cmpi slt, %87, %3 : vector<8x1xi32>
    %89 = vector.shape_cast %88 : vector<8x1xi1> to vector<8x1xi1>
    %90 = vector.broadcast %89 : vector<8x1xi1> to vector<8x128xi1>
    %91 = arith.select %90, %85, %43 : vector<8x128xi1>, vector<8x128xf32>
    %92 = vector.shape_cast %88 : vector<8x1xi1> to vector<8x1xi1>
    %93 = vector.broadcast %92 : vector<8x1xi1> to vector<8x128xi1>
    %94 = arith.select %93, %83, %46 : vector<8x128xi1>, vector<8x128xf32>
    %cst_25 = arith.constant 0.000000e+00 : f32
    %95 = vector.shape_cast %88 : vector<8x1xi1> to vector<8x1xi1>
    %96 = vector.broadcast %95 : vector<8x1xi1> to vector<8x128xi1>
    %97 = vector.broadcast %cst_25 : f32 to vector<8x128xf32>
    %98 = arith.select %96, %85, %97 : vector<8x128xi1>, vector<8x128xf32>
    %99 = arith.index_cast %c1_i32 : i32 to index
    %c0_26 = arith.constant 0 : index
    %c0_27 = arith.constant 0 : index
    %100 = vector.load %arg5[%99, %c0_26, %c0_27] : memref<8x8x128xf32, #tpu.memory_space<vmem>>, vector<1x8x128xf32>
    %101 = vector.shape_cast %100 : vector<1x8x128xf32> to vector<8x128xf32>
    %102 = vector.shape_cast %98 : vector<8x128xf32> to vector<1x8x128xf32>
    tpu.vector_store %arg5[%99, %c0_26, %c0_27], %102 {strides = array<i32>} : memref<8x8x128xf32, #tpu.memory_space<vmem>>, vector<1x8x128xf32>,
    %c2_i32 = arith.constant 2 : i32
    %103 = arith.index_cast %c2_i32 : i32 to index
    %c0_28 = arith.constant 0 : index
    %c0_29 = arith.constant 0 : index
    %104 = vector.load %arg2[%103, %c0_28, %c0_29] : memref<8x8x512xf32, #tpu.memory_space<vmem>>, vector<1x8x512xf32>
    %105 = vector.shape_cast %104 : vector<1x8x512xf32> to vector<8x512xf32>
    %c0_30 = arith.constant 0 : index
    %c0_31 = arith.constant 0 : index
    %106 = vector.load %arg4[%c0_30, %c0_31] : memref<128x512xf32, #tpu.memory_space<vmem>>, vector<128x512xf32>
    %cst_32 = arith.constant dense<0.000000e+00> : vector<8x512xf32>
    %107 = tpu.matmul %91, %106, %cst_32 {dimension_numbers = #tpu.dot_dimension_numbers<[1], [0], [0], [1], [0, 0, 1, 1], [], []>} : vector<8x128xf32>, vector<128x512xf32>, vector<8x512xf32> -> vector<8x512xf32>
    %108 = arith.addf %105, %107 : vector<8x512xf32>
    %109 = vector.extract_strided_slice %108 {offsets = [0, 0], sizes = [8, 128], strides = [1, 1]} : vector<8x512xf32> to vector<8x128xf32>
    %110 = arith.negf %109 : vector<8x128xf32>
    %111 = math.exp %110 : vector<8x128xf32>
    %cst_33 = arith.constant 1.000000e+00 : f32
    %112 = vector.broadcast %cst_33 : f32 to vector<8x128xf32>
    %113 = arith.addf %112, %111 : vector<8x128xf32>
    %114 = arith.divf %112, %113 : vector<8x128xf32>
    %115 = vector.extract_strided_slice %108 {offsets = [0, 128], sizes = [8, 128], strides = [1, 1]} : vector<8x512xf32> to vector<8x128xf32>
    %116 = arith.negf %115 : vector<8x128xf32>
    %117 = math.exp %116 : vector<8x128xf32>
    %cst_34 = arith.constant 1.000000e+00 : f32
    %118 = vector.broadcast %cst_34 : f32 to vector<8x128xf32>
    %119 = arith.addf %118, %117 : vector<8x128xf32>
    %120 = arith.divf %118, %119 : vector<8x128xf32>
    %121 = vector.extract_strided_slice %108 {offsets = [0, 256], sizes = [8, 128], strides = [1, 1]} : vector<8x512xf32> to vector<8x128xf32>
    %122 = math.tanh %121 : vector<8x128xf32>
    %123 = vector.extract_strided_slice %108 {offsets = [0, 384], sizes = [8, 128], strides = [1, 1]} : vector<8x512xf32> to vector<8x128xf32>
    %124 = arith.negf %123 : vector<8x128xf32>
    %125 = math.exp %124 : vector<8x128xf32>
    %cst_35 = arith.constant 1.000000e+00 : f32
    %126 = vector.broadcast %cst_35 : f32 to vector<8x128xf32>
    %127 = arith.addf %126, %125 : vector<8x128xf32>
    %128 = arith.divf %126, %127 : vector<8x128xf32>
    %129 = arith.mulf %120, %94 : vector<8x128xf32>
    %130 = arith.mulf %114, %122 : vector<8x128xf32>
    %131 = arith.addf %129, %130 : vector<8x128xf32>
    %132 = math.tanh %131 : vector<8x128xf32>
    %133 = arith.mulf %128, %132 : vector<8x128xf32>
    %134 = arith.addi %4, %c2_i32 : i32
    %135 = vector.broadcast %134 : i32 to vector<8x1xi32>
    %136 = arith.cmpi slt, %135, %3 : vector<8x1xi32>
    %137 = vector.shape_cast %136 : vector<8x1xi1> to vector<8x1xi1>
    %138 = vector.broadcast %137 : vector<8x1xi1> to vector<8x128xi1>
    %139 = arith.select %138, %133, %91 : vector<8x128xi1>, vector<8x128xf32>
    %140 = vector.shape_cast %136 : vector<8x1xi1> to vector<8x1xi1>
    %141 = vector.broadcast %140 : vector<8x1xi1> to vector<8x128xi1>
    %142 = arith.select %141, %131, %94 : vector<8x128xi1>, vector<8x128xf32>
    %cst_36 = arith.constant 0.000000e+00 : f32
    %143 = vector.shape_cast %136 : vector<8x1xi1> to vector<8x1xi1>
    %144 = vector.broadcast %143 : vector<8x1xi1> to vector<8x128xi1>
    %145 = vector.broadcast %cst_36 : f32 to vector<8x128xf32>
    %146 = arith.select %144, %133, %145 : vector<8x128xi1>, vector<8x128xf32>
    %147 = arith.index_cast %c2_i32 : i32 to index
    %c0_37 = arith.constant 0 : index
    %c0_38 = arith.constant 0 : index
    %148 = vector.load %arg5[%147, %c0_37, %c0_38] : memref<8x8x128xf32, #tpu.memory_space<vmem>>, vector<1x8x128xf32>
    %149 = vector.shape_cast %148 : vector<1x8x128xf32> to vector<8x128xf32>
    %150 = vector.shape_cast %146 : vector<8x128xf32> to vector<1x8x128xf32>
    tpu.vector_store %arg5[%147, %c0_37, %c0_38], %150 {strides = array<i32>} : memref<8x8x128xf32, #tpu.memory_space<vmem>>, vector<1x8x128xf32>,
    %c3_i32 = arith.constant 3 : i32
    %151 = arith.index_cast %c3_i32 : i32 to index
    %c0_39 = arith.constant 0 : index
    %c0_40 = arith.constant 0 : index
    %152 = vector.load %arg2[%151, %c0_39, %c0_40] : memref<8x8x512xf32, #tpu.memory_space<vmem>>, vector<1x8x512xf32>
    %153 = vector.shape_cast %152 : vector<1x8x512xf32> to vector<8x512xf32>
    %c0_41 = arith.constant 0 : index
    %c0_42 = arith.constant 0 : index
    %154 = vector.load %arg4[%c0_41, %c0_42] : memref<128x512xf32, #tpu.memory_space<vmem>>, vector<128x512xf32>
    %cst_43 = arith.constant dense<0.000000e+00> : vector<8x512xf32>
    %155 = tpu.matmul %139, %154, %cst_43 {dimension_numbers = #tpu.dot_dimension_numbers<[1], [0], [0], [1], [0, 0, 1, 1], [], []>} : vector<8x128xf32>, vector<128x512xf32>, vector<8x512xf32> -> vector<8x512xf32>
    %156 = arith.addf %153, %155 : vector<8x512xf32>
    %157 = vector.extract_strided_slice %156 {offsets = [0, 0], sizes = [8, 128], strides = [1, 1]} : vector<8x512xf32> to vector<8x128xf32>
    %158 = arith.negf %157 : vector<8x128xf32>
    %159 = math.exp %158 : vector<8x128xf32>
    %cst_44 = arith.constant 1.000000e+00 : f32
    %160 = vector.broadcast %cst_44 : f32 to vector<8x128xf32>
    %161 = arith.addf %160, %159 : vector<8x128xf32>
    %162 = arith.divf %160, %161 : vector<8x128xf32>
    %163 = vector.extract_strided_slice %156 {offsets = [0, 128], sizes = [8, 128], strides = [1, 1]} : vector<8x512xf32> to vector<8x128xf32>
    %164 = arith.negf %163 : vector<8x128xf32>
    %165 = math.exp %164 : vector<8x128xf32>
    %cst_45 = arith.constant 1.000000e+00 : f32
    %166 = vector.broadcast %cst_45 : f32 to vector<8x128xf32>
    %167 = arith.addf %166, %165 : vector<8x128xf32>
    %168 = arith.divf %166, %167 : vector<8x128xf32>
    %169 = vector.extract_strided_slice %156 {offsets = [0, 256], sizes = [8, 128], strides = [1, 1]} : vector<8x512xf32> to vector<8x128xf32>
    %170 = math.tanh %169 : vector<8x128xf32>
    %171 = vector.extract_strided_slice %156 {offsets = [0, 384], sizes = [8, 128], strides = [1, 1]} : vector<8x512xf32> to vector<8x128xf32>
    %172 = arith.negf %171 : vector<8x128xf32>
    %173 = math.exp %172 : vector<8x128xf32>
    %cst_46 = arith.constant 1.000000e+00 : f32
    %174 = vector.broadcast %cst_46 : f32 to vector<8x128xf32>
    %175 = arith.addf %174, %173 : vector<8x128xf32>
    %176 = arith.divf %174, %175 : vector<8x128xf32>
    %177 = arith.mulf %168, %142 : vector<8x128xf32>
    %178 = arith.mulf %162, %170 : vector<8x128xf32>
    %179 = arith.addf %177, %178 : vector<8x128xf32>
    %180 = math.tanh %179 : vector<8x128xf32>
    %181 = arith.mulf %176, %180 : vector<8x128xf32>
    %182 = arith.addi %4, %c3_i32 : i32
    %183 = vector.broadcast %182 : i32 to vector<8x1xi32>
    %184 = arith.cmpi slt, %183, %3 : vector<8x1xi32>
    %185 = vector.shape_cast %184 : vector<8x1xi1> to vector<8x1xi1>
    %186 = vector.broadcast %185 : vector<8x1xi1> to vector<8x128xi1>
    %187 = arith.select %186, %181, %139 : vector<8x128xi1>, vector<8x128xf32>
    %188 = vector.shape_cast %184 : vector<8x1xi1> to vector<8x1xi1>
    %189 = vector.broadcast %188 : vector<8x1xi1> to vector<8x128xi1>
    %190 = arith.select %189, %179, %142 : vector<8x128xi1>, vector<8x128xf32>
    %cst_47 = arith.constant 0.000000e+00 : f32
    %191 = vector.shape_cast %184 : vector<8x1xi1> to vector<8x1xi1>
    %192 = vector.broadcast %191 : vector<8x1xi1> to vector<8x128xi1>
    %193 = vector.broadcast %cst_47 : f32 to vector<8x128xf32>
    %194 = arith.select %192, %181, %193 : vector<8x128xi1>, vector<8x128xf32>
    %195 = arith.index_cast %c3_i32 : i32 to index
    %c0_48 = arith.constant 0 : index
    %c0_49 = arith.constant 0 : index
    %196 = vector.load %arg5[%195, %c0_48, %c0_49] : memref<8x8x128xf32, #tpu.memory_space<vmem>>, vector<1x8x128xf32>
    %197 = vector.shape_cast %196 : vector<1x8x128xf32> to vector<8x128xf32>
    %198 = vector.shape_cast %194 : vector<8x128xf32> to vector<1x8x128xf32>
    tpu.vector_store %arg5[%195, %c0_48, %c0_49], %198 {strides = array<i32>} : memref<8x8x128xf32, #tpu.memory_space<vmem>>, vector<1x8x128xf32>,
    %c4_i32 = arith.constant 4 : i32
    %199 = arith.index_cast %c4_i32 : i32 to index
    %c0_50 = arith.constant 0 : index
    %c0_51 = arith.constant 0 : index
    %200 = vector.load %arg2[%199, %c0_50, %c0_51] : memref<8x8x512xf32, #tpu.memory_space<vmem>>, vector<1x8x512xf32>
    %201 = vector.shape_cast %200 : vector<1x8x512xf32> to vector<8x512xf32>
    %c0_52 = arith.constant 0 : index
    %c0_53 = arith.constant 0 : index
    %202 = vector.load %arg4[%c0_52, %c0_53] : memref<128x512xf32, #tpu.memory_space<vmem>>, vector<128x512xf32>
    %cst_54 = arith.constant dense<0.000000e+00> : vector<8x512xf32>
    %203 = tpu.matmul %187, %202, %cst_54 {dimension_numbers = #tpu.dot_dimension_numbers<[1], [0], [0], [1], [0, 0, 1, 1], [], []>} : vector<8x128xf32>, vector<128x512xf32>, vector<8x512xf32> -> vector<8x512xf32>
    %204 = arith.addf %201, %203 : vector<8x512xf32>
    %205 = vector.extract_strided_slice %204 {offsets = [0, 0], sizes = [8, 128], strides = [1, 1]} : vector<8x512xf32> to vector<8x128xf32>
    %206 = arith.negf %205 : vector<8x128xf32>
    %207 = math.exp %206 : vector<8x128xf32>
    %cst_55 = arith.constant 1.000000e+00 : f32
    %208 = vector.broadcast %cst_55 : f32 to vector<8x128xf32>
    %209 = arith.addf %208, %207 : vector<8x128xf32>
    %210 = arith.divf %208, %209 : vector<8x128xf32>
    %211 = vector.extract_strided_slice %204 {offsets = [0, 128], sizes = [8, 128], strides = [1, 1]} : vector<8x512xf32> to vector<8x128xf32>
    %212 = arith.negf %211 : vector<8x128xf32>
    %213 = math.exp %212 : vector<8x128xf32>
    %cst_56 = arith.constant 1.000000e+00 : f32
    %214 = vector.broadcast %cst_56 : f32 to vector<8x128xf32>
    %215 = arith.addf %214, %213 : vector<8x128xf32>
    %216 = arith.divf %214, %215 : vector<8x128xf32>
    %217 = vector.extract_strided_slice %204 {offsets = [0, 256], sizes = [8, 128], strides = [1, 1]} : vector<8x512xf32> to vector<8x128xf32>
    %218 = math.tanh %217 : vector<8x128xf32>
    %219 = vector.extract_strided_slice %204 {offsets = [0, 384], sizes = [8, 128], strides = [1, 1]} : vector<8x512xf32> to vector<8x128xf32>
    %220 = arith.negf %219 : vector<8x128xf32>
    %221 = math.exp %220 : vector<8x128xf32>
    %cst_57 = arith.constant 1.000000e+00 : f32
    %222 = vector.broadcast %cst_57 : f32 to vector<8x128xf32>
    %223 = arith.addf %222, %221 : vector<8x128xf32>
    %224 = arith.divf %222, %223 : vector<8x128xf32>
    %225 = arith.mulf %216, %190 : vector<8x128xf32>
    %226 = arith.mulf %210, %218 : vector<8x128xf32>
    %227 = arith.addf %225, %226 : vector<8x128xf32>
    %228 = math.tanh %227 : vector<8x128xf32>
    %229 = arith.mulf %224, %228 : vector<8x128xf32>
    %230 = arith.addi %4, %c4_i32 : i32
    %231 = vector.broadcast %230 : i32 to vector<8x1xi32>
    %232 = arith.cmpi slt, %231, %3 : vector<8x1xi32>
    %233 = vector.shape_cast %232 : vector<8x1xi1> to vector<8x1xi1>
    %234 = vector.broadcast %233 : vector<8x1xi1> to vector<8x128xi1>
    %235 = arith.select %234, %229, %187 : vector<8x128xi1>, vector<8x128xf32>
    %236 = vector.shape_cast %232 : vector<8x1xi1> to vector<8x1xi1>
    %237 = vector.broadcast %236 : vector<8x1xi1> to vector<8x128xi1>
    %238 = arith.select %237, %227, %190 : vector<8x128xi1>, vector<8x128xf32>
    %cst_58 = arith.constant 0.000000e+00 : f32
    %239 = vector.shape_cast %232 : vector<8x1xi1> to vector<8x1xi1>
    %240 = vector.broadcast %239 : vector<8x1xi1> to vector<8x128xi1>
    %241 = vector.broadcast %cst_58 : f32 to vector<8x128xf32>
    %242 = arith.select %240, %229, %241 : vector<8x128xi1>, vector<8x128xf32>
    %243 = arith.index_cast %c4_i32 : i32 to index
    %c0_59 = arith.constant 0 : index
    %c0_60 = arith.constant 0 : index
    %244 = vector.load %arg5[%243, %c0_59, %c0_60] : memref<8x8x128xf32, #tpu.memory_space<vmem>>, vector<1x8x128xf32>
    %245 = vector.shape_cast %244 : vector<1x8x128xf32> to vector<8x128xf32>
    %246 = vector.shape_cast %242 : vector<8x128xf32> to vector<1x8x128xf32>
    tpu.vector_store %arg5[%243, %c0_59, %c0_60], %246 {strides = array<i32>} : memref<8x8x128xf32, #tpu.memory_space<vmem>>, vector<1x8x128xf32>,
    %c5_i32 = arith.constant 5 : i32
    %247 = arith.index_cast %c5_i32 : i32 to index
    %c0_61 = arith.constant 0 : index
    %c0_62 = arith.constant 0 : index
    %248 = vector.load %arg2[%247, %c0_61, %c0_62] : memref<8x8x512xf32, #tpu.memory_space<vmem>>, vector<1x8x512xf32>
    %249 = vector.shape_cast %248 : vector<1x8x512xf32> to vector<8x512xf32>
    %c0_63 = arith.constant 0 : index
    %c0_64 = arith.constant 0 : index
    %250 = vector.load %arg4[%c0_63, %c0_64] : memref<128x512xf32, #tpu.memory_space<vmem>>, vector<128x512xf32>
    %cst_65 = arith.constant dense<0.000000e+00> : vector<8x512xf32>
    %251 = tpu.matmul %235, %250, %cst_65 {dimension_numbers = #tpu.dot_dimension_numbers<[1], [0], [0], [1], [0, 0, 1, 1], [], []>} : vector<8x128xf32>, vector<128x512xf32>, vector<8x512xf32> -> vector<8x512xf32>
    %252 = arith.addf %249, %251 : vector<8x512xf32>
    %253 = vector.extract_strided_slice %252 {offsets = [0, 0], sizes = [8, 128], strides = [1, 1]} : vector<8x512xf32> to vector<8x128xf32>
    %254 = arith.negf %253 : vector<8x128xf32>
    %255 = math.exp %254 : vector<8x128xf32>
    %cst_66 = arith.constant 1.000000e+00 : f32
    %256 = vector.broadcast %cst_66 : f32 to vector<8x128xf32>
    %257 = arith.addf %256, %255 : vector<8x128xf32>
    %258 = arith.divf %256, %257 : vector<8x128xf32>
    %259 = vector.extract_strided_slice %252 {offsets = [0, 128], sizes = [8, 128], strides = [1, 1]} : vector<8x512xf32> to vector<8x128xf32>
    %260 = arith.negf %259 : vector<8x128xf32>
    %261 = math.exp %260 : vector<8x128xf32>
    %cst_67 = arith.constant 1.000000e+00 : f32
    %262 = vector.broadcast %cst_67 : f32 to vector<8x128xf32>
    %263 = arith.addf %262, %261 : vector<8x128xf32>
    %264 = arith.divf %262, %263 : vector<8x128xf32>
    %265 = vector.extract_strided_slice %252 {offsets = [0, 256], sizes = [8, 128], strides = [1, 1]} : vector<8x512xf32> to vector<8x128xf32>
    %266 = math.tanh %265 : vector<8x128xf32>
    %267 = vector.extract_strided_slice %252 {offsets = [0, 384], sizes = [8, 128], strides = [1, 1]} : vector<8x512xf32> to vector<8x128xf32>
    %268 = arith.negf %267 : vector<8x128xf32>
    %269 = math.exp %268 : vector<8x128xf32>
    %cst_68 = arith.constant 1.000000e+00 : f32
    %270 = vector.broadcast %cst_68 : f32 to vector<8x128xf32>
    %271 = arith.addf %270, %269 : vector<8x128xf32>
    %272 = arith.divf %270, %271 : vector<8x128xf32>
    %273 = arith.mulf %264, %238 : vector<8x128xf32>
    %274 = arith.mulf %258, %266 : vector<8x128xf32>
    %275 = arith.addf %273, %274 : vector<8x128xf32>
    %276 = math.tanh %275 : vector<8x128xf32>
    %277 = arith.mulf %272, %276 : vector<8x128xf32>
    %278 = arith.addi %4, %c5_i32 : i32
    %279 = vector.broadcast %278 : i32 to vector<8x1xi32>
    %280 = arith.cmpi slt, %279, %3 : vector<8x1xi32>
    %281 = vector.shape_cast %280 : vector<8x1xi1> to vector<8x1xi1>
    %282 = vector.broadcast %281 : vector<8x1xi1> to vector<8x128xi1>
    %283 = arith.select %282, %277, %235 : vector<8x128xi1>, vector<8x128xf32>
    %284 = vector.shape_cast %280 : vector<8x1xi1> to vector<8x1xi1>
    %285 = vector.broadcast %284 : vector<8x1xi1> to vector<8x128xi1>
    %286 = arith.select %285, %275, %238 : vector<8x128xi1>, vector<8x128xf32>
    %cst_69 = arith.constant 0.000000e+00 : f32
    %287 = vector.shape_cast %280 : vector<8x1xi1> to vector<8x1xi1>
    %288 = vector.broadcast %287 : vector<8x1xi1> to vector<8x128xi1>
    %289 = vector.broadcast %cst_69 : f32 to vector<8x128xf32>
    %290 = arith.select %288, %277, %289 : vector<8x128xi1>, vector<8x128xf32>
    %291 = arith.index_cast %c5_i32 : i32 to index
    %c0_70 = arith.constant 0 : index
    %c0_71 = arith.constant 0 : index
    %292 = vector.load %arg5[%291, %c0_70, %c0_71] : memref<8x8x128xf32, #tpu.memory_space<vmem>>, vector<1x8x128xf32>
    %293 = vector.shape_cast %292 : vector<1x8x128xf32> to vector<8x128xf32>
    %294 = vector.shape_cast %290 : vector<8x128xf32> to vector<1x8x128xf32>
    tpu.vector_store %arg5[%291, %c0_70, %c0_71], %294 {strides = array<i32>} : memref<8x8x128xf32, #tpu.memory_space<vmem>>, vector<1x8x128xf32>,
    %c6_i32 = arith.constant 6 : i32
    %295 = arith.index_cast %c6_i32 : i32 to index
    %c0_72 = arith.constant 0 : index
    %c0_73 = arith.constant 0 : index
    %296 = vector.load %arg2[%295, %c0_72, %c0_73] : memref<8x8x512xf32, #tpu.memory_space<vmem>>, vector<1x8x512xf32>
    %297 = vector.shape_cast %296 : vector<1x8x512xf32> to vector<8x512xf32>
    %c0_74 = arith.constant 0 : index
    %c0_75 = arith.constant 0 : index
    %298 = vector.load %arg4[%c0_74, %c0_75] : memref<128x512xf32, #tpu.memory_space<vmem>>, vector<128x512xf32>
    %cst_76 = arith.constant dense<0.000000e+00> : vector<8x512xf32>
    %299 = tpu.matmul %283, %298, %cst_76 {dimension_numbers = #tpu.dot_dimension_numbers<[1], [0], [0], [1], [0, 0, 1, 1], [], []>} : vector<8x128xf32>, vector<128x512xf32>, vector<8x512xf32> -> vector<8x512xf32>
    %300 = arith.addf %297, %299 : vector<8x512xf32>
    %301 = vector.extract_strided_slice %300 {offsets = [0, 0], sizes = [8, 128], strides = [1, 1]} : vector<8x512xf32> to vector<8x128xf32>
    %302 = arith.negf %301 : vector<8x128xf32>
    %303 = math.exp %302 : vector<8x128xf32>
    %cst_77 = arith.constant 1.000000e+00 : f32
    %304 = vector.broadcast %cst_77 : f32 to vector<8x128xf32>
    %305 = arith.addf %304, %303 : vector<8x128xf32>
    %306 = arith.divf %304, %305 : vector<8x128xf32>
    %307 = vector.extract_strided_slice %300 {offsets = [0, 128], sizes = [8, 128], strides = [1, 1]} : vector<8x512xf32> to vector<8x128xf32>
    %308 = arith.negf %307 : vector<8x128xf32>
    %309 = math.exp %308 : vector<8x128xf32>
    %cst_78 = arith.constant 1.000000e+00 : f32
    %310 = vector.broadcast %cst_78 : f32 to vector<8x128xf32>
    %311 = arith.addf %310, %309 : vector<8x128xf32>
    %312 = arith.divf %310, %311 : vector<8x128xf32>
    %313 = vector.extract_strided_slice %300 {offsets = [0, 256], sizes = [8, 128], strides = [1, 1]} : vector<8x512xf32> to vector<8x128xf32>
    %314 = math.tanh %313 : vector<8x128xf32>
    %315 = vector.extract_strided_slice %300 {offsets = [0, 384], sizes = [8, 128], strides = [1, 1]} : vector<8x512xf32> to vector<8x128xf32>
    %316 = arith.negf %315 : vector<8x128xf32>
    %317 = math.exp %316 : vector<8x128xf32>
    %cst_79 = arith.constant 1.000000e+00 : f32
    %318 = vector.broadcast %cst_79 : f32 to vector<8x128xf32>
    %319 = arith.addf %318, %317 : vector<8x128xf32>
    %320 = arith.divf %318, %319 : vector<8x128xf32>
    %321 = arith.mulf %312, %286 : vector<8x128xf32>
    %322 = arith.mulf %306, %314 : vector<8x128xf32>
    %323 = arith.addf %321, %322 : vector<8x128xf32>
    %324 = math.tanh %323 : vector<8x128xf32>
    %325 = arith.mulf %320, %324 : vector<8x128xf32>
    %326 = arith.addi %4, %c6_i32 : i32
    %327 = vector.broadcast %326 : i32 to vector<8x1xi32>
    %328 = arith.cmpi slt, %327, %3 : vector<8x1xi32>
    %329 = vector.shape_cast %328 : vector<8x1xi1> to vector<8x1xi1>
    %330 = vector.broadcast %329 : vector<8x1xi1> to vector<8x128xi1>
    %331 = arith.select %330, %325, %283 : vector<8x128xi1>, vector<8x128xf32>
    %332 = vector.shape_cast %328 : vector<8x1xi1> to vector<8x1xi1>
    %333 = vector.broadcast %332 : vector<8x1xi1> to vector<8x128xi1>
    %334 = arith.select %333, %323, %286 : vector<8x128xi1>, vector<8x128xf32>
    %cst_80 = arith.constant 0.000000e+00 : f32
    %335 = vector.shape_cast %328 : vector<8x1xi1> to vector<8x1xi1>
    %336 = vector.broadcast %335 : vector<8x1xi1> to vector<8x128xi1>
    %337 = vector.broadcast %cst_80 : f32 to vector<8x128xf32>
    %338 = arith.select %336, %325, %337 : vector<8x128xi1>, vector<8x128xf32>
    %339 = arith.index_cast %c6_i32 : i32 to index
    %c0_81 = arith.constant 0 : index
    %c0_82 = arith.constant 0 : index
    %340 = vector.load %arg5[%339, %c0_81, %c0_82] : memref<8x8x128xf32, #tpu.memory_space<vmem>>, vector<1x8x128xf32>
    %341 = vector.shape_cast %340 : vector<1x8x128xf32> to vector<8x128xf32>
    %342 = vector.shape_cast %338 : vector<8x128xf32> to vector<1x8x128xf32>
    tpu.vector_store %arg5[%339, %c0_81, %c0_82], %342 {strides = array<i32>} : memref<8x8x128xf32, #tpu.memory_space<vmem>>, vector<1x8x128xf32>,
    %c7_i32 = arith.constant 7 : i32
    %343 = arith.index_cast %c7_i32 : i32 to index
    %c0_83 = arith.constant 0 : index
    %c0_84 = arith.constant 0 : index
    %344 = vector.load %arg2[%343, %c0_83, %c0_84] : memref<8x8x512xf32, #tpu.memory_space<vmem>>, vector<1x8x512xf32>
    %345 = vector.shape_cast %344 : vector<1x8x512xf32> to vector<8x512xf32>
    %c0_85 = arith.constant 0 : index
    %c0_86 = arith.constant 0 : index
    %346 = vector.load %arg4[%c0_85, %c0_86] : memref<128x512xf32, #tpu.memory_space<vmem>>, vector<128x512xf32>
    %cst_87 = arith.constant dense<0.000000e+00> : vector<8x512xf32>
    %347 = tpu.matmul %331, %346, %cst_87 {dimension_numbers = #tpu.dot_dimension_numbers<[1], [0], [0], [1], [0, 0, 1, 1], [], []>} : vector<8x128xf32>, vector<128x512xf32>, vector<8x512xf32> -> vector<8x512xf32>
    %348 = arith.addf %345, %347 : vector<8x512xf32>
    %349 = vector.extract_strided_slice %348 {offsets = [0, 0], sizes = [8, 128], strides = [1, 1]} : vector<8x512xf32> to vector<8x128xf32>
    %350 = arith.negf %349 : vector<8x128xf32>
    %351 = math.exp %350 : vector<8x128xf32>
    %cst_88 = arith.constant 1.000000e+00 : f32
    %352 = vector.broadcast %cst_88 : f32 to vector<8x128xf32>
    %353 = arith.addf %352, %351 : vector<8x128xf32>
    %354 = arith.divf %352, %353 : vector<8x128xf32>
    %355 = vector.extract_strided_slice %348 {offsets = [0, 128], sizes = [8, 128], strides = [1, 1]} : vector<8x512xf32> to vector<8x128xf32>
    %356 = arith.negf %355 : vector<8x128xf32>
    %357 = math.exp %356 : vector<8x128xf32>
    %cst_89 = arith.constant 1.000000e+00 : f32
    %358 = vector.broadcast %cst_89 : f32 to vector<8x128xf32>
    %359 = arith.addf %358, %357 : vector<8x128xf32>
    %360 = arith.divf %358, %359 : vector<8x128xf32>
    %361 = vector.extract_strided_slice %348 {offsets = [0, 256], sizes = [8, 128], strides = [1, 1]} : vector<8x512xf32> to vector<8x128xf32>
    %362 = math.tanh %361 : vector<8x128xf32>
    %363 = vector.extract_strided_slice %348 {offsets = [0, 384], sizes = [8, 128], strides = [1, 1]} : vector<8x512xf32> to vector<8x128xf32>
    %364 = arith.negf %363 : vector<8x128xf32>
    %365 = math.exp %364 : vector<8x128xf32>
    %cst_90 = arith.constant 1.000000e+00 : f32
    %366 = vector.broadcast %cst_90 : f32 to vector<8x128xf32>
    %367 = arith.addf %366, %365 : vector<8x128xf32>
    %368 = arith.divf %366, %367 : vector<8x128xf32>
    %369 = arith.mulf %360, %334 : vector<8x128xf32>
    %370 = arith.mulf %354, %362 : vector<8x128xf32>
    %371 = arith.addf %369, %370 : vector<8x128xf32>
    %372 = math.tanh %371 : vector<8x128xf32>
    %373 = arith.mulf %368, %372 : vector<8x128xf32>
    %374 = arith.addi %4, %c7_i32 : i32
    %375 = vector.broadcast %374 : i32 to vector<8x1xi32>
    %376 = arith.cmpi slt, %375, %3 : vector<8x1xi32>
    %377 = vector.shape_cast %376 : vector<8x1xi1> to vector<8x1xi1>
    %378 = vector.broadcast %377 : vector<8x1xi1> to vector<8x128xi1>
    %379 = arith.select %378, %373, %331 : vector<8x128xi1>, vector<8x128xf32>
    %380 = vector.shape_cast %376 : vector<8x1xi1> to vector<8x1xi1>
    %381 = vector.broadcast %380 : vector<8x1xi1> to vector<8x128xi1>
    %382 = arith.select %381, %371, %334 : vector<8x128xi1>, vector<8x128xf32>
    %cst_91 = arith.constant 0.000000e+00 : f32
    %383 = vector.shape_cast %376 : vector<8x1xi1> to vector<8x1xi1>
    %384 = vector.broadcast %383 : vector<8x1xi1> to vector<8x128xi1>
    %385 = vector.broadcast %cst_91 : f32 to vector<8x128xf32>
    %386 = arith.select %384, %373, %385 : vector<8x128xi1>, vector<8x128xf32>
    %387 = arith.index_cast %c7_i32 : i32 to index
    %c0_92 = arith.constant 0 : index
    %c0_93 = arith.constant 0 : index
    %388 = vector.load %arg5[%387, %c0_92, %c0_93] : memref<8x8x128xf32, #tpu.memory_space<vmem>>, vector<1x8x128xf32>
    %389 = vector.shape_cast %388 : vector<1x8x128xf32> to vector<8x128xf32>
    %390 = vector.shape_cast %386 : vector<8x128xf32> to vector<1x8x128xf32>
    tpu.vector_store %arg5[%387, %c0_92, %c0_93], %390 {strides = array<i32>} : memref<8x8x128xf32, #tpu.memory_space<vmem>>, vector<1x8x128xf32>,
    %c8_i32_94 = arith.constant 8 : i32
    %c0_95 = arith.constant 0 : index
    %c0_96 = arith.constant 0 : index
    %391 = vector.load %arg6[%c0_95, %c0_96] : memref<8x128xf32, #tpu.memory_space<vmem>>, vector<8x128xf32>
    tpu.vector_store %arg6[%c0_95, %c0_96], %379 {strides = array<i32>} : memref<8x128xf32, #tpu.memory_space<vmem>>, vector<8x128xf32>,
    %c0_97 = arith.constant 0 : index
    %c0_98 = arith.constant 0 : index
    %392 = vector.load %arg7[%c0_97, %c0_98] : memref<8x128xf32, #tpu.memory_space<vmem>>, vector<8x128xf32>
    tpu.vector_store %arg7[%c0_97, %c0_98], %382 {strides = array<i32>} : memref<8x128xf32, #tpu.memory_space<vmem>>, vector<8x128xf32>,
    return
  }
  func.func @transform_0(%arg0: i32, %arg1: i32) -> (i32, i32, i32) {
    %c0_i32 = arith.constant 0 : i32
    %c0_i32_0 = arith.constant 0 : i32
    return %arg1, %arg0, %c0_i32 : i32, i32, i32
  }
  func.func @transform_1(%arg0: i32, %arg1: i32) -> (i32, i32) {
    %c0_i32 = arith.constant 0 : i32
    %c0_i32_0 = arith.constant 0 : i32
    return %arg0, %c0_i32 : i32, i32
  }
  func.func @transform_2(%arg0: i32, %arg1: i32) -> (i32, i32) {
    %c0_i32 = arith.constant 0 : i32
    %c0_i32_0 = arith.constant 0 : i32
    %c0_i32_1 = arith.constant 0 : i32
    return %c0_i32, %c0_i32_0 : i32, i32
  }
  func.func @transform_3(%arg0: i32, %arg1: i32) -> (i32, i32, i32) {
    %c0_i32 = arith.constant 0 : i32
    %c0_i32_0 = arith.constant 0 : i32
    return %arg1, %arg0, %c0_i32 : i32, i32, i32
  }
  func.func @transform_4(%arg0: i32, %arg1: i32) -> (i32, i32) {
    %c0_i32 = arith.constant 0 : i32
    %c0_i32_0 = arith.constant 0 : i32
    return %arg0, %c0_i32 : i32, i32
  }
  func.func @transform_5(%arg0: i32, %arg1: i32) -> (i32, i32) {
    %c0_i32 = arith.constant 0 : i32
    %c0_i32_0 = arith.constant 0 : i32
    return %arg0, %c0_i32 : i32, i32
  }
}

</mosaic_0001>

<bundles_post_ra>
// kernel: tpu_custom_call.1
= control target key start
LH: loop header
LB: loop body
LE: loop exit
PB: predicated region body
PF: predicated region fallthrough
CT: control target
= control target key end

     0   :  { %11 = vsyncpa [#allocation3], 0  ;;  %s3494_s0 = inlined_call_operand.hbm [shape: f32[8,8,512], index: 0, kind: input, shape index: {}]   ;;  %s3495_s1 = inlined_call_operand.vmem [shape: s32[8,1], index: 1, kind: input, shape index: {}]   ;;  %s3496_s2 = inlined_call_operand.hbm [shape: f32[128,512], index: 2, kind: input, shape index: {}]   ;;  %s3497_s3 = inlined_call_operand.hbm [shape: f32[8,8,128], index: 3, kind: output, shape index: {0}]   ;;  %s3498_s4 = inlined_call_operand.hbm [shape: f32[8,128], index: 4, kind: output, shape index: {1}]   ;;  %s3499_s5 = inlined_call_operand.hbm [shape: f32[8,128], index: 5, kind: output, shape index: {2}]  }
   0x1   :  { %12 = vsyncpa [#allocation6], 0 }
   0x2   :  { %13 = vsyncpa [#allocation4], 0 }
   0x3   :  { %14 = vsyncpa [#allocation9], 0  ;;  %s2922_s18 = smov [#allocation2]   ;;  %s2804_s22 = scalar_lea.hbm %s3494_s0, 4096 }
   0x4   :  { %s20_s19 = sshll.u32 %s2922_s18, 4  ;;  %p2805_p0 = scmp.ne.s32.totalorder %s3494_s0, %s2804_s22  ;;  %s21_s19 = int_to_ptr.vmem [resolvable:$true] %s20_s19 }
   0x5   :  { %p2808_p1 = scmp.lt.u32.totalorder %s2804_s22, %s3494_s0 }
   0x7   :  { %p2810_p2 = pnand %p2808_p1, %p2805_p0 }
   0x9   :  { %2813 = shalt.err (!%p2810_p2)
}
   0xa   :  { %s2814_s27 = scalar_lea.vmem %s21_s19, 4096  ;;  %p2819_p4 = scmp.lt.s32.totalorder %s21_s19, %s21_s19 }
   0xb   :  { %p2815_p3 = scmp.ne.s32.totalorder %s21_s19, %s2814_s27  ;;  %p2820_p5 = scmp.lt.s32.totalorder %s2814_s27, %s2814_s27 }
   0xd   :  { %p2821_p6 = por %p2820_p5, %p2819_p4 }
   0xf   :  { %p2822_p7 = pnand %p2821_p6, %p2815_p3 }
  0x11   :  { %2825 = shalt.err (!%p2822_p7)
}
  0x12   :  { %s2923_s28 = smov 512   ;;  %s2924_s29 = smov 32  }
  0x13   :  { %26 = dma.hbm_to_vmem [thread:$0]  %s3494_s0, 4096, %s21_s19, [#allocation3], %s2923_s28, %s2923_s28, %s2924_s29  }
  0x14   :  { %s2925_s7 = smov [#allocation5]   ;;  %s2826_s11 = scalar_lea.hbm %s3496_s2, 8192 }
  0x15   :  { %s34_s8 = sshll.u32 %s2925_s7, 4  ;;  %p2827_p8 = scmp.ne.s32.totalorder %s3496_s2, %s2826_s11  ;;  %s35_s8 = int_to_ptr.vmem [resolvable:$true] %s34_s8 }
  0x16   :  { %p2830_p9 = scmp.lt.u32.totalorder %s2826_s11, %s3496_s2 }
  0x18   :  { %p2832_p10 = pnand %p2830_p9, %p2827_p8 }
  0x1a   :  { %2835 = shalt.err (!%p2832_p10)
}
  0x1b   :  { %s2836_s16 = scalar_lea.vmem %s35_s8, 8192  ;;  %p2841_p12 = scmp.lt.s32.totalorder %s35_s8, %s35_s8 }
  0x1c   :  { %p2837_p11 = scmp.ne.s32.totalorder %s35_s8, %s2836_s16  ;;  %p2842_p13 = scmp.lt.s32.totalorder %s2836_s16, %s2836_s16 }
  0x1e   :  { %p2843_p0 = por %p2842_p13, %p2841_p12 }
  0x20   :  { %p2844_p1 = pnand %p2843_p0, %p2837_p11 }
  0x22   :  { %2847 = shalt.err (!%p2844_p1)
}
  0x23   :  { %40 = dma.hbm_to_vmem [thread:$0]  %s3496_s2, 8192, %s35_s8, [#allocation6], %s2923_s28, %s2923_s28, %s2924_s29  }
  0x24   :  { %2914 = dma.done.wait [#allocation3], 4096  }
  0x25   :  { %2915 = vsyncadd [#allocation3], 4294963200 }
  0x26   :  { %2916 = dma.done.wait [#allocation6], 8192  }
  0x27   :  { %2917 = vsyncadd [#allocation6], 4294959104  ;;  %v2926_v0 = vmov 0.0   ;;  %v2927_v1 = vmov 0   ;;  %v62_v2 = vld [vmem:[#allocation5 + $0x8] sm:$0xff]  ;;  %v61_v4 = vld [vmem:[#allocation5] sm:$0xff] }
  0x28   :  { %189 = vmatprep.mubr.f32.mxu0 %v2926_v0  ;;  %260 = vmatprep.mubr.f32.mxu1 %v2926_v0  ;;  %v66_v3 = vld [vmem:[#allocation5 + $0x28] sm:$0xff]  ;;  %v65_v6 = vld [vmem:[#allocation5 + $0x20] sm:$0xff]  ;;  %v64_v20 = vld [vmem:[#allocation5 + $0x18] sm:$0xff]  ;;  %s2929_s20 = smov [#allocation7]   ;;  %s2930_s22 = smov [#allocation10]  }
  0x29   :  { %2672 = vset.pattern.permute.xlu0 %v2927_v1  ;;  %2673 = vset.pattern.permute.xlu1 %v2927_v1  ;;  %v2991_v5 = vpack.c.bf16 %v66_v3, %v62_v2  ;;  %v70_v7 = vld [vmem:[#allocation5 + $0x48] sm:$0xff]  ;;  %v2993_v9 = vpack.c.bf16 %v65_v6, %v61_v4  ;;  %v69_v11 = vld [vmem:[#allocation5 + $0x40] sm:$0xff]  ;;  %v68_v21 = vld [vmem:[#allocation5 + $0x38] sm:$0xff]  ;;  %s2077_s21 = sshll.u32 %s2929_s20, 4  ;;  %s2100_s23 = sshll.u32 %s2930_s22, 4  ;;  %s3442_s21 = int_to_ptr.vmem [resolvable:$true] %s2077_s21  ;;  %s3446_s23 = int_to_ptr.vmem [resolvable:$true] %s2100_s23 }
  0x2a   :  { %v74_v8 = vld [vmem:[#allocation5 + $0x68] sm:$0xff]  ;;  %v73_v12 = vld [vmem:[#allocation5 + $0x60] sm:$0xff]  ;;  %v3004_v23 = vpack.c.bf16 %v68_v21, %v64_v20  ;;  %v63_v24 = vld [vmem:[#allocation5 + $0x10] sm:$0xff] }
  0x2b   :  { %v2995_v10 = vpack.c.bf16 %v74_v8, %v70_v7  ;;  %v78_v13 = vld [vmem:[#allocation5 + $0x88] sm:$0xff]  ;;  %2150 = vmatprep.subr.bf16.mxu0 %v2991_v5  ;;  %v2999_v15 = vpack.c.bf16 %v73_v12, %v69_v11  ;;  %v77_v16 = vld [vmem:[#allocation5 + $0x80] sm:$0xff]  ;;  %v67_v25 = vld [vmem:[#allocation5 + $0x30] sm:$0xff] }
  0x2c   :  { %v82_v14 = vld [vmem:[#allocation5 + $0xa8] sm:$0xff]  ;;  %2152 = vmatpush1.bf16.msra.mxu0 %v2993_v9  ;;  %v81_v17 = vld [vmem:[#allocation5 + $0xa0] sm:$0xff]  ;;  %v3006_v26 = vpack.c.bf16 %v67_v25, %v63_v24  ;;  %2182 = vmatprep.subr.bf16.mxu1 %v3004_v23  ;;  %v72_v28 = vld [vmem:[#allocation5 + $0x58] sm:$0xff] }
  0x2d   :  { %2154 = vmatprep.subr.bf16.mxu0 %v2995_v10  ;;  %v3002_v18 = vpack.c.bf16 %v82_v14, %v78_v13  ;;  %v86_v19 = vld [vmem:[#allocation5 + $0xc8] sm:$0xff]  ;;  %v3009_v27 = vpack.c.bf16 %v81_v17, %v77_v16  ;;  %v76_v29 = vld [vmem:[#allocation5 + $0x78] sm:$0xff]  ;;  %v71_v30 = vld [vmem:[#allocation5 + $0x50] sm:$0xff] }
  0x2e   :  { %v90_v22 = vld [vmem:[#allocation5 + $0xe8] sm:$0xff]  ;;  %v85_v32 = vld [vmem:[#allocation5 + $0xc0] sm:$0xff]  ;;  %2184 = vmatpush1.bf16.msra.mxu1 %v3006_v26  ;;  %v3016_v34 = vpack.c.bf16 %v76_v29, %v72_v28  ;;  %v75_v35 = vld [vmem:[#allocation5 + $0x70] sm:$0xff] }
  0x2f   :  { %v3013_v31 = vpack.c.bf16 %v90_v22, %v86_v19  ;;  %v89_v33 = vld [vmem:[#allocation5 + $0xe0] sm:$0xff]  ;;  %v94_v36 = vld [vmem:[#allocation5 + $0x108] sm:$0xff]  ;;  %v3018_v38 = vpack.c.bf16 %v75_v35, %v71_v30  ;;  %v80_v39 = vld [vmem:[#allocation5 + $0x98] sm:$0xff] }
  0x30   :  { %2156 = vmatpush1.bf16.msra.mxu0 %v2999_v15  ;;  %v98_v37 = vld [vmem:[#allocation5 + $0x128] sm:$0xff]  ;;  %2186 = vmatprep.subr.bf16.mxu1 %v3016_v34  ;;  %v84_v40 = vld [vmem:[#allocation5 + $0xb8] sm:$0xff]  ;;  %v79_v41 = vld [vmem:[#allocation5 + $0x90] sm:$0xff]  ;;  %v3022_v43 = vpack.c.bf16 %v89_v33, %v85_v32 }
  0x31   :  { %2158 = vmatprep.subr.bf16.mxu0 %v3002_v18  ;;  %v83_v42 = vld [vmem:[#allocation5 + $0xb0] sm:$0xff]  ;;  %v93_v44 = vld [vmem:[#allocation5 + $0x100] sm:$0xff]  ;;  %v3024_v46 = vpack.c.bf16 %v84_v40, %v80_v39  ;;  %v3027_v47 = vpack.c.bf16 %v98_v37, %v94_v36  ;;  %v102_v48 = vld [vmem:[#allocation5 + $0x148] sm:$0xff] }
  0x32   :  { %v97_v45 = vld [vmem:[#allocation5 + $0x120] sm:$0xff]  ;;  %2188 = vmatpush1.bf16.msra.mxu1 %v3018_v38  ;;  %v3030_v49 = vpack.c.bf16 %v83_v42, %v79_v41  ;;  %v88_v50 = vld [vmem:[#allocation5 + $0xd8] sm:$0xff]  ;;  %v106_v52 = vld [vmem:[#allocation5 + $0x168] sm:$0xff] }
  0x33   :  { %v92_v51 = vld [vmem:[#allocation5 + $0xf8] sm:$0xff]  ;;  %2190 = vmatprep.subr.bf16.mxu1 %v3024_v46  ;;  %v87_v54 = vld [vmem:[#allocation5 + $0xd0] sm:$0xff]  ;;  %v3036_v56 = vpack.c.bf16 %v97_v45, %v93_v44  ;;  %v3039_v59 = vpack.c.bf16 %v106_v52, %v102_v48  ;;  %v101_v60 = vld [vmem:[#allocation5 + $0x140] sm:$0xff] }
  0x34   :  { %2160 = vmatpush1.bf16.msra.mxu0 %v3009_v27  ;;  %v3033_v53 = vpack.c.bf16 %v92_v51, %v88_v50  ;;  %v91_v55 = vld [vmem:[#allocation5 + $0xf0] sm:$0xff]  ;;  %v96_v57 = vld [vmem:[#allocation5 + $0x118] sm:$0xff]  ;;  %v105_v61 = vld [vmem:[#allocation5 + $0x160] sm:$0xff] }
  0x35   :  { %2162 = vmatprep.subr.bf16.mxu0 %v3013_v31  ;;  %v100_v58 = vld [vmem:[#allocation5 + $0x138] sm:$0xff]  ;;  %v110_v62 = vld [vmem:[#allocation5 + $0x188] sm:$0xff]  ;;  %v3042_v63 = vpack.c.bf16 %v91_v55, %v87_v54  ;;  %v95_v4 = vld [vmem:[#allocation5 + $0x110] sm:$0xff]  ;;  %v3048_v11 = vpack.c.bf16 %v105_v61, %v101_v60 }
  0x36   :  { %2192 = vmatpush1.bf16.msra.mxu1 %v3030_v49  ;;  %v114_v2 = vld [vmem:[#allocation5 + $0x1a8] sm:$0xff]  ;;  %v3045_v3 = vpack.c.bf16 %v100_v58, %v96_v57  ;;  %v99_v6 = vld [vmem:[#allocation5 + $0x130] sm:$0xff]  ;;  %v104_v7 = vld [vmem:[#allocation5 + $0x158] sm:$0xff] }
  0x37   :  { %2194 = vmatprep.subr.bf16.mxu1 %v3033_v53  ;;  %v108_v8 = vld [vmem:[#allocation5 + $0x178] sm:$0xff]  ;;  %v109_v12 = vld [vmem:[#allocation5 + $0x180] sm:$0xff]  ;;  %v3051_v13 = vpack.c.bf16 %v114_v2, %v110_v62  ;;  %v118_v16 = vld [vmem:[#allocation5 + $0x1c8] sm:$0xff]  ;;  %v3054_v17 = vpack.c.bf16 %v99_v6, %v95_v4 }
  0x38   :  { %2164 = vmatpush1.bf16.msra.mxu0 %v3022_v43  ;;  %v113_v14 = vld [vmem:[#allocation5 + $0x1a0] sm:$0xff]  ;;  %v122_v20 = vld [vmem:[#allocation5 + $0x1e8] sm:$0xff]  ;;  %v3062_v21 = vpack.c.bf16 %v108_v8, %v104_v7  ;;  %v103_v22 = vld [vmem:[#allocation5 + $0x150] sm:$0xff] }
  0x39   :  { %2166 = vmatprep.subr.bf16.mxu0 %v3027_v47  ;;  %v3059_v19 = vld [vmem:[%s3495_s1] sm:$0xff]  ;;  %v107_v24 = vld [vmem:[#allocation5 + $0x170] sm:$0xff]  ;;  %v112_v25 = vld [vmem:[#allocation5 + $0x198] sm:$0xff]  ;;  %v3068_v30 = vpack.c.bf16 %v113_v14, %v109_v12  ;;  %v3071_v32 = vpack.c.bf16 %v122_v20, %v118_v16  ;;  %s2928_s1 = smov [#allocation8]  }
  0x3a   :  { %2196 = vmatpush1.bf16.msra.mxu1 %v3042_v63  ;;  %vm2120_vm0 = vcmp.gt.s32.totalorder %v3059_v19, 0  ;;  %vm2124_vm1 = vcmp.gt.s32.totalorder %v3059_v19, 1  ;;  %v116_v28 = vld [vmem:[#allocation5 + $0x1b8] sm:$0xff]  ;;  %v117_v33 = vld [vmem:[#allocation5 + $0x1c0] sm:$0xff]  ;;  %v3074_v36 = vpack.c.bf16 %v107_v24, %v103_v22  ;;  %v111_v40 = vld [vmem:[#allocation5 + $0x190] sm:$0xff]  ;;  %vm2136_vm2 = vcmp.gt.s32.totalorder %v3059_v19, 4 }
  0x3b   :  { %2198 = vmatprep.subr.bf16.mxu1 %v3045_v3  ;;  %v297_v29 = vsel %vm2120_vm0, 1, %v2927_v1  ;;  %v121_v35 = vld [vmem:[#allocation5 + $0x1e0] sm:$0xff]  ;;  %v548_v37 = vsel %vm2124_vm1, 1, %v2927_v1  ;;  %v3078_v39 = vpack.c.bf16 %v116_v28, %v112_v25  ;;  %v115_v41 = vld [vmem:[#allocation5 + $0x1b0] sm:$0xff]  ;;  %v120_v42 = vld [vmem:[#allocation5 + $0x1d8] sm:$0xff]  ;;  %v1304_v50 = vsel %vm2136_vm2, 1, %v2927_v1 }
  0x3c   :  { %2168 = vmatpush1.bf16.msra.mxu0 %v3036_v56  ;;  %299 = vperm.xlu0 %2672, %v297_v29   ;;  %v124_v44 = vld [vmem:[#allocation5 + $0x1f8] sm:$0xff]  ;;  %v3082_v45 = vpack.c.bf16 %v121_v35, %v117_v33  ;;  %v3086_v48 = vpack.c.bf16 %v115_v41, %v111_v40  ;;  %v119_v52 = vld [vmem:[#allocation5 + $0x1d0] sm:$0xff]  ;;  %vm2144_vm3 = vcmp.gt.s32.totalorder %v3059_v19, 6  ;;  %v57_v58 = vld [vmem:[#allocation2] sm:$0xff]  ;;  %vm2128_vm5 = vcmp.gt.s32.totalorder %v3059_v19, 2  ;;  %s2090_s19 = sshll.u32 %s2928_s1, 4  ;;  %s2091_s19 = int_to_ptr.vmem [resolvable:$true] %s2090_s19 }
  0x3d   :  { %2170 = vmatprep.subr.bf16.mxu0 %v3039_v59  ;;  %v3090_v51 = vpack.c.bf16 %v124_v44, %v120_v42  ;;  %v123_v54 = vld [vmem:[#allocation5 + $0x1f0] sm:$0xff]  ;;  %v1808_v57 = vsel %vm2144_vm3, 1, %v2927_v1  ;;  %v58_v60 = vld [vmem:[#allocation2 + $0x8] sm:$0xff]  ;;  %v60_v8 = vld [vmem:[#allocation2 + $0x18] sm:$0xff]  ;;  %vm2132_vm6 = vcmp.gt.s32.totalorder %v3059_v19, 3  ;;  %vm2140_vm7 = vcmp.gt.s32.totalorder %v3059_v19, 5  ;;  %p2853_p3 = scmp.lt.s32.totalorder %s2091_s19, %s2091_s19 }
  0x3e   :  { %2200 = vmatpush1.bf16.msra.mxu1 %v3054_v17  ;;  %v3095_v55 = vpack.c.bf16 %v123_v54, %v119_v52  ;;  %v59_v16 = vld [vmem:[#allocation2 + $0x10] sm:$0xff]  ;;  %vm2148_vm8 = vcmp.gt.s32.totalorder %v3059_v19, 7  ;;  %s2848_s24 = scalar_lea.vmem %s2091_s19, 128 }
  0x3f   :  { %2202 = vmatprep.subr.bf16.mxu1 %v3062_v21  ;;  %p2849_p2 = scmp.ne.s32.totalorder %s2091_s19, %s2848_s24  ;;  %p2854_p4 = scmp.lt.s32.totalorder %s2848_s24, %s2848_s24 }
  0x40   :  { %2172 = vmatpush1.bf16.msra.mxu0 %v3048_v11  ;;  %550 = vperm.xlu0 %2672, %v548_v37  }
  0x41   :  { %2174 = vmatprep.subr.bf16.mxu0 %v3051_v13  ;;  %p2855_p5 = por %p2854_p4, %p2853_p3 }
  0x42   :  { %2204 = vmatpush1.bf16.msra.mxu1 %v3074_v36 }
  0x43   :  { %2206 = vmatprep.subr.bf16.mxu1 %v3078_v39  ;;  %p2856_p6 = pnand %p2855_p5, %p2849_p2 }
  0x44   :  { %2176 = vmatpush1.bf16.msra.mxu0 %v3068_v30  ;;  %1306 = vperm.xlu0 %2672, %v1304_v50  }
  0x45   :  { %2178 = vmatprep.subr.bf16.mxu0 %v3071_v32 }
  0x46   :  { %2208 = vmatpush1.bf16.msra.mxu1 %v3086_v48 }
  0x47   :  { %2210 = vmatprep.subr.bf16.mxu1 %v3090_v51 }
  0x48   :  { %2180 = vmatpush1.bf16.msra.mxu0 %v3082_v45  ;;  %1810 = vperm.xlu0 %2672, %v1808_v57  }
  0x49   :  { %2214 = vmatprep.subr.bf16.mxu0 %v2991_v5 }
  0x4a   :  { %2212 = vmatpush1.bf16.msra.mxu1 %v3095_v55 }
  0x4b   :  { %190 = vmatmul.mubr.f32.vlgmr.msra.gmra.mrb[0].mxu0 %v2926_v0  ;;  %2246 = vmatprep.subr.bf16.mxu1 %v3004_v23 }
  0x4c   :  { %2216 = vmatpush1.bf16.msra.mxu0 %v2993_v9  ;;  %439 = vmatprep.mubr.f32.mxu0 %v2926_v0 }
  0x4d   :  { %2218 = vmatprep.subr.bf16.mxu0 %v2995_v10  ;;  %261 = vmatmul.mubr.f32.vlgmr.msra.gmra.mrb[0].mxu1 %v2926_v0 }
  0x4e   :  { %2248 = vmatpush1.bf16.msra.mxu1 %v3006_v26  ;;  %510 = vmatprep.mubr.f32.mxu1 %v2926_v0 }
  0x4f   :  { %2250 = vmatprep.subr.bf16.mxu1 %v3016_v34 }
  0x50   :  { %2220 = vmatpush1.bf16.msra.mxu0 %v2999_v15 }
  0x51   :  { %2222 = vmatprep.subr.bf16.mxu0 %v3002_v18 }
  0x52   :  { %2252 = vmatpush1.bf16.msra.mxu1 %v3018_v38 }
  0x53   :  { %2254 = vmatprep.subr.bf16.mxu1 %v3024_v46 }
  0x54   :  { %2224 = vmatpush1.bf16.msra.mxu0 %v3009_v27 }
  0x55   :  { %2226 = vmatprep.subr.bf16.mxu0 %v3013_v31 }
  0x56   :  { %2256 = vmatpush1.bf16.msra.mxu1 %v3030_v49 }
  0x57   :  { %2258 = vmatprep.subr.bf16.mxu1 %v3033_v53 }
  0x58   :  { %2228 = vmatpush1.bf16.msra.mxu0 %v3022_v43 }
  0x59   :  { %2230 = vmatprep.subr.bf16.mxu0 %v3027_v47 }
  0x5a   :  { %2260 = vmatpush1.bf16.msra.mxu1 %v3042_v63 }
  0x5b   :  { %2262 = vmatprep.subr.bf16.mxu1 %v3045_v3 }
  0x5c   :  { %2232 = vmatpush1.bf16.msra.mxu0 %v3036_v56 }
  0x5d   :  { %2234 = vmatprep.subr.bf16.mxu0 %v3039_v59 }
  0x5e   :  { %2264 = vmatpush1.bf16.msra.mxu1 %v3054_v17 }
  0x5f   :  { %2266 = vmatprep.subr.bf16.mxu1 %v3062_v21 }
  0x60   :  { %2236 = vmatpush1.bf16.msra.mxu0 %v3048_v11 }
  0x61   :  { %2238 = vmatprep.subr.bf16.mxu0 %v3051_v13 }
  0x62   :  { %2268 = vmatpush1.bf16.msra.mxu1 %v3074_v36 }
  0x63   :  { %2270 = vmatprep.subr.bf16.mxu1 %v3078_v39 }
  0x64   :  { %2240 = vmatpush1.bf16.msra.mxu0 %v3068_v30 }
  0x65   :  { %2242 = vmatprep.subr.bf16.mxu0 %v3071_v32 }
  0x66   :  { %2272 = vmatpush1.bf16.msra.mxu1 %v3086_v48 }
  0x67   :  { %2274 = vmatprep.subr.bf16.mxu1 %v3090_v51 }
  0x68   :  { %2244 = vmatpush1.bf16.msra.mxu0 %v3082_v45 }
  0x69   :  { %2278 = vmatprep.subr.bf16.mxu0 %v2991_v5 }
  0x6a   :  { %2276 = vmatpush1.bf16.msra.mxu1 %v3095_v55 }
  0x6b   :  { %2310 = vmatprep.subr.bf16.mxu1 %v3004_v23 }
  0xbb   :  { %v300_v41 = vpop.permute.xlu0 %299 }
  0xbc   :  { %vm301_vm4 = vcmp.eq.s32.totalorder %v300_v41, 1 }
 0x11e   :  { %v191_v61 = vpop.f32.mrb[0].mxu0 }
 0x11f   :  { %v267_v62 = vadd.f32 %v191_v61, %v57_v58  ;;  %v193_v2 = vpop.f32.mrb[1].mxu0 }
 0x120   :  { %v268_v4 = vadd.f32 %v193_v2, %v58_v60  ;;  %v262_v12 = vpop.f32.mrb[0].mxu1 }
 0x121   :  { %v2117_v6 = vmul.f32 -1.442695, %v267_v62  ;;  %v264_v14 = vpop.f32.mrb[1].mxu1  ;;  %v269_v22 = vadd.f32 %v262_v12, %v59_v16 }
 0x122   :  { %v2118_v7 = vmul.f32 -1.442695, %v268_v4  ;;  %v270_v5 = vadd.f32 %v264_v14, %v60_v8 }
 0x123   :  { %2674 = vpow2.f32 %v2117_v6 }
 0x124   :  { %2676 = vpow2.f32 %v2118_v7  ;;  %v2119_v20 = vmul.f32 -1.442695, %v270_v5  ;;  %v551_v7 = vpop.permute.xlu0 %550 }
 0x125   :  { %vm552_vm9 = vcmp.eq.s32.totalorder %v551_v7, 1 }
 0x126   :  { %2678 = vpow2.f32 %v2119_v20 }
 0x127   :  { %2680 = vtanh.f32 %v269_v22 }
 0x12d   :  { %v2675_v24 = vpop.eup %2674 }
 0x12e   :  { %v2677_v25 = vpop.eup %2676  ;;  %v274_v28 = vadd.f32 1.0, %v2675_v24  ;;  %v816_v24 = vld [vmem:[#allocation5 + $0x8] sm:$0xff] }
 0x12f   :  { %v280_v29 = vadd.f32 1.0, %v2677_v25  ;;  %v820_v25 = vld [vmem:[#allocation5 + $0x28] sm:$0xff] }
 0x130   :  { %2682 = vrcp.f32 %v274_v28  ;;  %v2679_v33 = vpop.eup %2678  ;;  %v3202_v28 = vpack.c.bf16 %v820_v25, %v816_v24  ;;  %v876_v24 = vld [vmem:[#allocation5 + $0x1e8] sm:$0xff]  ;;  %v874_v25 = vld [vmem:[#allocation5 + $0x1d8] sm:$0xff] }
 0x131   :  { %2684 = vrcp.f32 %v280_v29  ;;  %v2681_v35 = vpop.eup %2680  ;;  %v287_v40 = vadd.f32 1.0, %v2679_v33  ;;  %v819_v29 = vld [vmem:[#allocation5 + $0x20] sm:$0xff] }
 0x133   :  { %2686 = vrcp.f32 %v287_v40  ;;  %v831_v40 = vld [vmem:[#allocation5 + $0x80] sm:$0xff] }
 0x13a   :  { %v2683_v37 = vpop.eup %2682 }
 0x13b   :  { %v2685_v42 = vpop.eup %2684  ;;  %v291_v44 = vmul.f32 %v2683_v37, %v2681_v35  ;;  %v836_v37 = vld [vmem:[#allocation5 + $0xa8] sm:$0xff] }
 0x13c   :  { %v290_v50 = vmul.f32 0.0, %v2685_v42  ;;  %v835_v42 = vld [vmem:[#allocation5 + $0xa0] sm:$0xff] }
 0x13d   :  { %v2687_v57 = vpop.eup %2686 }
 0x13e   :  { %v292_v52 = vadd.f32 %v291_v44, %v290_v50  ;;  %v840_v44 = vld [vmem:[#allocation5 + $0xc8] sm:$0xff] }
 0x13f   :  { %v844_v50 = vld [vmem:[#allocation5 + $0xe8] sm:$0xff] }
 0x140   :  { %2688 = vtanh.f32 %v292_v52  ;;  %v3138_v54 = vsel %vm301_vm4, %v292_v52, 0.0  ;;  %v3216_v52 = vpack.c.bf16 %v835_v42, %v831_v40  ;;  %v559_v42 = vld [vmem:[#allocation2 + $0x40] sm:$0xff] }
 0x14a   :  { %v2689_v58 = vpop.eup %2688 }
 0x14b   :  { %v294_v60 = vmul.f32 %v2689_v58, %v2687_v57  ;;  %v839_v57 = vld [vmem:[#allocation5 + $0xc0] sm:$0xff] }
 0x14c   :  { %v843_v58 = vld [vmem:[#allocation5 + $0xe0] sm:$0xff] }
 0x14d   :  { %v3140_v61 = vsel %vm301_vm4, %v294_v60, 0.0  ;;  %2802 = vmatmul.mubr.msk.f32.vlgmr.msra.gmra.mrb[2].mxu0 %vm301_vm4, %v294_v60  ;;  %2803 = vmatmul.mubr.msk.f32.vlgmr.msra.gmra.mrb[2].mxu1 %vm301_vm4, %v294_v60  ;;  %v3222_v60 = vpack.c.bf16 %v843_v58, %v839_v57 }
 0x14e   :  { %305 = vst [vmem:[#allocation7] sm:$0xff] %v3140_v61  ;;  %2280 = vmatpush1.bf16.msra.mxu0 %v2993_v9  ;;  %2312 = vmatpush1.bf16.msra.mxu1 %v3006_v26  ;;  %v800_v9 = vsel %vm2128_vm5, 1, %v2927_v1 }
 0x14f   :  { %2282 = vmatprep.subr.bf16.mxu0 %v2995_v10  ;;  %2314 = vmatprep.subr.bf16.mxu1 %v3016_v34  ;;  %v1052_v10 = vsel %vm2132_vm6, 1, %v2927_v1 }
 0x150   :  { %691 = vmatprep.mubr.f32.mxu0 %v2926_v0  ;;  %762 = vmatprep.mubr.f32.mxu1 %v2926_v0 }
 0x151   :  { %802 = vperm.xlu1 %2673, %v800_v9   ;;  %v852_v9 = vld [vmem:[#allocation5 + $0x128] sm:$0xff] }
 0x152   :  { %2284 = vmatpush1.bf16.msra.mxu0 %v2999_v15  ;;  %2316 = vmatpush1.bf16.msra.mxu1 %v3018_v38  ;;  %v1556_v15 = vsel %vm2140_vm7, 1, %v2927_v1 }
 0x153   :  { %2286 = vmatprep.subr.bf16.mxu0 %v3002_v18  ;;  %2318 = vmatprep.subr.bf16.mxu1 %v3024_v46  ;;  %v2060_v18 = vsel %vm2148_vm8, 1, %v2927_v1 }
 0x155   :  { %1054 = vperm.xlu1 %2673, %v1052_v10   ;;  %v850_v10 = vld [vmem:[#allocation5 + $0x118] sm:$0xff] }
 0x156   :  { %2288 = vmatpush1.bf16.msra.mxu0 %v3009_v27  ;;  %2320 = vmatpush1.bf16.msra.mxu1 %v3030_v49  ;;  %v308_v27 = vld [vmem:[#allocation2 + $0x28] sm:$0xff] }
 0x157   :  { %2290 = vmatprep.subr.bf16.mxu0 %v3013_v31  ;;  %2322 = vmatprep.subr.bf16.mxu1 %v3033_v53 }
 0x159   :  { %1558 = vperm.xlu1 %2673, %v1556_v15  }
 0x15a   :  { %2292 = vmatpush1.bf16.msra.mxu0 %v3022_v43  ;;  %2324 = vmatpush1.bf16.msra.mxu1 %v3042_v63 }
 0x15b   :  { %2294 = vmatprep.subr.bf16.mxu0 %v3027_v47  ;;  %2326 = vmatprep.subr.bf16.mxu1 %v3045_v3 }
 0x15d   :  { %2062 = vperm.xlu1 %2673, %v2060_v18   ;;  %v854_v18 = vld [vmem:[#allocation5 + $0x138] sm:$0xff] }
 0x15e   :  { %2296 = vmatpush1.bf16.msra.mxu0 %v3036_v56  ;;  %2328 = vmatpush1.bf16.msra.mxu1 %v3054_v17  ;;  %v310_v17 = vld [vmem:[#allocation2 + $0x38] sm:$0xff] }
 0x15f   :  { %2298 = vmatprep.subr.bf16.mxu0 %v3039_v59  ;;  %2330 = vmatprep.subr.bf16.mxu1 %v3062_v21 }
 0x162   :  { %2300 = vmatpush1.bf16.msra.mxu0 %v3048_v11  ;;  %2332 = vmatpush1.bf16.msra.mxu1 %v3074_v36 }
 0x163   :  { %2302 = vmatprep.subr.bf16.mxu0 %v3051_v13  ;;  %2334 = vmatprep.subr.bf16.mxu1 %v3078_v39 }
 0x166   :  { %2304 = vmatpush1.bf16.msra.mxu0 %v3068_v30  ;;  %2336 = vmatpush1.bf16.msra.mxu1 %v3086_v48  ;;  %v309_v30 = vld [vmem:[#allocation2 + $0x30] sm:$0xff] }
 0x167   :  { %2306 = vmatprep.subr.bf16.mxu0 %v3071_v32  ;;  %2338 = vmatprep.subr.bf16.mxu1 %v3090_v51 }
 0x16a   :  { %2308 = vmatpush1.bf16.msra.mxu0 %v3082_v45  ;;  %2340 = vmatpush1.bf16.msra.mxu1 %v3095_v55 }
 0x16b   :  { %2374 = vmatprep.subr.bf16.mxu1 %v3004_v23  ;;  %v307_v23 = vld [vmem:[#allocation2 + $0x20] sm:$0xff]  ;;  %2342 = vmatprep.subr.bf16.mxu0 %v3202_v28 }
 0x220   :  { %v441_v31 = vpop.f32.mrb[2].mxu0  ;;  %v512_v43 = vpop.f32.mrb[2].mxu1 }
 0x221   :  { %v517_v47 = vadd.f32 %v441_v31, %v307_v23  ;;  %v443_v56 = vpop.f32.mrb[3].mxu0  ;;  %v514_v59 = vpop.f32.mrb[3].mxu1  ;;  %v519_v32 = vadd.f32 %v512_v43, %v309_v30  ;;  %v847_v23 = vld [vmem:[#allocation5 + $0x100] sm:$0xff]  ;;  %v3228_v31 = vpack.c.bf16 %v854_v18, %v850_v10 }
 0x222   :  { %v518_v3 = vadd.f32 %v443_v56, %v308_v27  ;;  %v520_v21 = vadd.f32 %v514_v59, %v310_v17  ;;  %v851_v27 = vld [vmem:[#allocation5 + $0x120] sm:$0xff]  ;;  %v853_v56 = vld [vmem:[#allocation5 + $0x130] sm:$0xff] }
 0x223   :  { %v2121_v11 = vmul.f32 -1.442695, %v517_v47  ;;  %v3230_v43 = vpack.c.bf16 %v851_v27, %v847_v23  ;;  %v849_v47 = vld [vmem:[#allocation5 + $0x110] sm:$0xff]  ;;  %v855_v30 = vld [vmem:[#allocation5 + $0x140] sm:$0xff]  ;;  %v562_v27 = vld [vmem:[#allocation2 + $0x58] sm:$0xff] }
 0x224   :  { %v2122_v13 = vmul.f32 -1.442695, %v518_v3  ;;  %v2123_v19 = vmul.f32 -1.442695, %v520_v21  ;;  %v3233_v59 = vpack.c.bf16 %v853_v56, %v849_v47  ;;  %v856_v3 = vld [vmem:[#allocation5 + $0x148] sm:$0xff]  ;;  %v862_v21 = vld [vmem:[#allocation5 + $0x178] sm:$0xff] }
 0x225   :  { %2690 = vpow2.f32 %v2121_v11  ;;  %v860_v11 = vld [vmem:[#allocation5 + $0x168] sm:$0xff]  ;;  %v561_v56 = vld [vmem:[#allocation2 + $0x50] sm:$0xff] }
 0x226   :  { %2692 = vpow2.f32 %v2122_v13  ;;  %v858_v13 = vld [vmem:[#allocation5 + $0x158] sm:$0xff]  ;;  %v3238_v17 = vpack.c.bf16 %v860_v11, %v856_v3 }
 0x227   :  { %2694 = vpow2.f32 %v2123_v19  ;;  %v859_v19 = vld [vmem:[#allocation5 + $0x160] sm:$0xff] }
 0x228   :  { %2696 = vtanh.f32 %v519_v32  ;;  %v3240_v32 = vpack.c.bf16 %v862_v21, %v858_v13 }
 0x22f   :  { %v2691_v36 = vpop.eup %2690 }
 0x230   :  { %v2693_v1 = vpop.eup %2692  ;;  %v524_v39 = vadd.f32 1.0, %v2691_v36  ;;  %v3242_v36 = vpack.c.bf16 %v859_v19, %v855_v30 }
 0x231   :  { %v530_v45 = vadd.f32 1.0, %v2693_v1  ;;  %v2695_v48 = vpop.eup %2694  ;;  %v857_v1 = vld [vmem:[#allocation5 + $0x150] sm:$0xff] }
 0x232   :  { %2698 = vrcp.f32 %v524_v39  ;;  %v2697_v51 = vpop.eup %2696  ;;  %v537_v4 = vadd.f32 1.0, %v2695_v48  ;;  %v861_v39 = vld [vmem:[#allocation5 + $0x170] sm:$0xff]  ;;  %v864_v48 = vld [vmem:[#allocation5 + $0x188] sm:$0xff] }
 0x233   :  { %2700 = vrcp.f32 %v530_v45  ;;  %v3245_v45 = vpack.c.bf16 %v861_v39, %v857_v1 }
 0x234   :  { %2702 = vrcp.f32 %v537_v4  ;;  %v863_v4 = vld [vmem:[#allocation5 + $0x180] sm:$0xff] }
 0x23c   :  { %v2699_v55 = vpop.eup %2698 }
 0x23d   :  { %v2701_v62 = vpop.eup %2700  ;;  %v541_v2 = vmul.f32 %v2699_v55, %v2697_v51  ;;  %v868_v51 = vld [vmem:[#allocation5 + $0x1a8] sm:$0xff]  ;;  %v866_v55 = vld [vmem:[#allocation5 + $0x198] sm:$0xff] }
 0x23e   :  { %v540_v6 = vmul.f32 %v2701_v62, %v3138_v54  ;;  %v2703_v14 = vpop.eup %2702  ;;  %v3250_v62 = vpack.c.bf16 %v868_v51, %v864_v48  ;;  %v803_v51 = vpop.permute.xlu1 %802 }
 0x23f   :  { %vm804_vm10 = vcmp.eq.s32.totalorder %v803_v51, 1 }
 0x240   :  { %v542_v8 = vadd.f32 %v541_v2, %v540_v6  ;;  %v870_v2 = vld [vmem:[#allocation5 + $0x1b8] sm:$0xff]  ;;  %v867_v6 = vld [vmem:[#allocation5 + $0x1a0] sm:$0xff] }
 0x241   :  { %v3252_v7 = vpack.c.bf16 %v870_v2, %v866_v55 }
 0x242   :  { %2704 = vtanh.f32 %v542_v8  ;;  %v3186_v12 = vsel %vm552_vm9, %v542_v8, %v3138_v54  ;;  %v3219_v54 = vpack.c.bf16 %v844_v50, %v840_v44  ;;  %v3254_v8 = vpack.c.bf16 %v867_v6, %v863_v4  ;;  %v560_v44 = vld [vmem:[#allocation2 + $0x48] sm:$0xff] }
 0x24c   :  { %v2705_v5 = vpop.eup %2704 }
 0x24d   :  { %v544_v16 = vmul.f32 %v2705_v5, %v2703_v14  ;;  %v865_v14 = vld [vmem:[#allocation5 + $0x190] sm:$0xff] }
 0x24e   :  { %v869_v5 = vld [vmem:[#allocation5 + $0x1b0] sm:$0xff] }
 0x24f   :  { %v3189_v20 = vsel %vm552_vm9, %v544_v16, %v3140_v61  ;;  %v555_v22 = vsel %vm552_vm9, %v544_v16, 0.0  ;;  %v848_v61 = vld [vmem:[#allocation5 + $0x108] sm:$0xff]  ;;  %v3257_v16 = vpack.c.bf16 %v869_v5, %v865_v14 }
 0x250   :  { %557 = vst [vmem:[#allocation7 + $0x8] sm:$0xff] %v555_v22  ;;  %692 = vmatmul.mubr.f32.vlgmr.msra.gmra.mrb[4].mxu0 %v3189_v20  ;;  %763 = vmatmul.mubr.f32.vlgmr.msra.gmra.mrb[4].mxu1 %v3189_v20  ;;  %v3226_v15 = vpack.c.bf16 %v852_v9, %v848_v61  ;;  %v872_v22 = vld [vmem:[#allocation5 + $0x1c8] sm:$0xff] }
 0x251   :  { %2376 = vmatpush1.bf16.msra.mxu1 %v3006_v26  ;;  %943 = vmatprep.mubr.f32.mxu0 %v2926_v0  ;;  %v815_v26 = vld [vmem:[#allocation5] sm:$0xff] }
 0x252   :  { %2378 = vmatprep.subr.bf16.mxu1 %v3016_v34  ;;  %1014 = vmatprep.mubr.f32.mxu1 %v2926_v0  ;;  %v3204_v33 = vpack.c.bf16 %v819_v29, %v815_v26  ;;  %v824_v34 = vld [vmem:[#allocation5 + $0x48] sm:$0xff]  ;;  %v3262_v26 = vpack.c.bf16 %v876_v24, %v872_v22  ;;  %v878_v29 = vld [vmem:[#allocation5 + $0x1f8] sm:$0xff] }
 0x254   :  { %2344 = vmatpush1.bf16.msra.mxu0 %v3204_v33 }
 0x255   :  { %2380 = vmatpush1.bf16.msra.mxu1 %v3018_v38  ;;  %v828_v38 = vld [vmem:[#allocation5 + $0x68] sm:$0xff] }
 0x256   :  { %2382 = vmatprep.subr.bf16.mxu1 %v3024_v46  ;;  %v3208_v46 = vpack.c.bf16 %v828_v38, %v824_v34  ;;  %v871_v34 = vld [vmem:[#allocation5 + $0x1c0] sm:$0xff] }
 0x257   :  { %v875_v38 = vld [vmem:[#allocation5 + $0x1e0] sm:$0xff] }
 0x258   :  { %2346 = vmatprep.subr.bf16.mxu0 %v3208_v46 }
 0x259   :  { %2384 = vmatpush1.bf16.msra.mxu1 %v3030_v49  ;;  %v823_v49 = vld [vmem:[#allocation5 + $0x40] sm:$0xff] }
 0x25a   :  { %2386 = vmatprep.subr.bf16.mxu1 %v3033_v53  ;;  %v827_v53 = vld [vmem:[#allocation5 + $0x60] sm:$0xff] }
 0x25b   :  { %v3210_v35 = vpack.c.bf16 %v827_v53, %v823_v49  ;;  %v3264_v49 = vpack.c.bf16 %v878_v29, %v874_v25  ;;  %v3266_v53 = vpack.c.bf16 %v875_v38, %v871_v34 }
 0x25d   :  { %2388 = vmatpush1.bf16.msra.mxu1 %v3042_v63  ;;  %v832_v63 = vld [vmem:[#allocation5 + $0x88] sm:$0xff]  ;;  %2348 = vmatpush1.bf16.msra.mxu0 %v3210_v35 }
 0x25e   :  { %v3213_v41 = vpack.c.bf16 %v836_v37, %v832_v63  ;;  %2390 = vmatprep.subr.bf16.mxu1 %v3228_v31  ;;  %v873_v63 = vld [vmem:[#allocation5 + $0x1d0] sm:$0xff] }
 0x25f   :  { %v877_v37 = vld [vmem:[#allocation5 + $0x1f0] sm:$0xff] }
 0x260   :  { %2350 = vmatprep.subr.bf16.mxu0 %v3213_v41  ;;  %v3269_v40 = vpack.c.bf16 %v877_v37, %v873_v63  ;;  %v1069_v63 = vld [vmem:[#allocation5 + $0x10] sm:$0xff] }
 0x261   :  { %2352 = vmatpush1.bf16.msra.mxu0 %v3216_v52  ;;  %2392 = vmatpush1.bf16.msra.mxu1 %v3233_v59  ;;  %v1073_v37 = vld [vmem:[#allocation5 + $0x30] sm:$0xff] }
 0x262   :  { %2354 = vmatprep.subr.bf16.mxu0 %v3219_v54  ;;  %2394 = vmatprep.subr.bf16.mxu1 %v3240_v32 }
 0x265   :  { %2356 = vmatpush1.bf16.msra.mxu0 %v3222_v60  ;;  %2396 = vmatpush1.bf16.msra.mxu1 %v3245_v45 }
 0x266   :  { %2358 = vmatprep.subr.bf16.mxu0 %v3226_v15  ;;  %2398 = vmatprep.subr.bf16.mxu1 %v3252_v7 }
 0x269   :  { %2360 = vmatpush1.bf16.msra.mxu0 %v3230_v43  ;;  %2400 = vmatpush1.bf16.msra.mxu1 %v3257_v16 }
 0x26a   :  { %2362 = vmatprep.subr.bf16.mxu0 %v3238_v17  ;;  %2402 = vmatprep.subr.bf16.mxu1 %v3264_v49 }
 0x26d   :  { %2364 = vmatpush1.bf16.msra.mxu0 %v3242_v36  ;;  %2404 = vmatpush1.bf16.msra.mxu1 %v3269_v40 }
 0x26e   :  { %2366 = vmatprep.subr.bf16.mxu0 %v3250_v62 }
 0x271   :  { %2368 = vmatpush1.bf16.msra.mxu0 %v3254_v8 }
 0x272   :  { %2370 = vmatprep.subr.bf16.mxu0 %v3262_v26 }
 0x275   :  { %2372 = vmatpush1.bf16.msra.mxu0 %v3266_v53 }
 0x276   :  { %2406 = vmatprep.subr.bf16.mxu0 %v3202_v28 }
 0x323   :  { %v693_v50 = vpop.f32.mrb[4].mxu0  ;;  %v764_v57 = vpop.f32.mrb[4].mxu1 }
 0x324   :  { %v769_v58 = vadd.f32 %v693_v50, %v559_v42  ;;  %v695_v61 = vpop.f32.mrb[5].mxu0  ;;  %v766_v9 = vpop.f32.mrb[5].mxu1  ;;  %v771_v11 = vadd.f32 %v764_v57, %v561_v56  ;;  %v3304_v42 = vpack.c.bf16 %v1073_v37, %v1069_v63  ;;  %v1082_v50 = vld [vmem:[#allocation5 + $0x78] sm:$0xff] }
 0x325   :  { %v770_v10 = vadd.f32 %v695_v61, %v560_v44  ;;  %v772_v47 = vadd.f32 %v766_v9, %v562_v27  ;;  %v1078_v44 = vld [vmem:[#allocation5 + $0x58] sm:$0xff]  ;;  %v1081_v61 = vld [vmem:[#allocation5 + $0x70] sm:$0xff] }
 0x326   :  { %v2125_v18 = vmul.f32 -1.442695, %v769_v58  ;;  %v3308_v57 = vpack.c.bf16 %v1082_v50, %v1078_v44  ;;  %v1077_v58 = vld [vmem:[#allocation5 + $0x50] sm:$0xff] }
 0x327   :  { %v2126_v23 = vmul.f32 -1.442695, %v770_v10  ;;  %v2127_v3 = vmul.f32 -1.442695, %v772_v47  ;;  %v3310_v9 = vpack.c.bf16 %v1081_v61, %v1077_v58  ;;  %v1086_v10 = vld [vmem:[#allocation5 + $0x98] sm:$0xff]  ;;  %v1085_v27 = vld [vmem:[#allocation5 + $0x90] sm:$0xff] }
 0x328   :  { %2706 = vpow2.f32 %v2125_v18  ;;  %v1090_v18 = vld [vmem:[#allocation5 + $0xb8] sm:$0xff]  ;;  %v1089_v47 = vld [vmem:[#allocation5 + $0xb0] sm:$0xff] }
 0x329   :  { %2708 = vpow2.f32 %v2126_v23  ;;  %v3314_v23 = vpack.c.bf16 %v1090_v18, %v1086_v10  ;;  %v3316_v56 = vpack.c.bf16 %v1089_v47, %v1085_v27 }
 0x32a   :  { %2710 = vpow2.f32 %v2127_v3  ;;  %v1094_v3 = vld [vmem:[#allocation5 + $0xd8] sm:$0xff] }
 0x32b   :  { %2712 = vtanh.f32 %v771_v11  ;;  %v1098_v11 = vld [vmem:[#allocation5 + $0xf8] sm:$0xff] }
 0x332   :  { %v2707_v13 = vpop.eup %2706 }
 0x333   :  { %v2709_v21 = vpop.eup %2708  ;;  %v776_v30 = vadd.f32 1.0, %v2707_v13  ;;  %v3320_v13 = vpack.c.bf16 %v1098_v11, %v1094_v3  ;;  %v1055_v11 = vpop.permute.xlu1 %1054 }
 0x334   :  { %v782_v19 = vadd.f32 1.0, %v2709_v21  ;;  %v2711_v1 = vpop.eup %2710  ;;  %v1093_v21 = vld [vmem:[#allocation5 + $0xd0] sm:$0xff]  ;;  %vm1056_vm11 = vcmp.eq.s32.totalorder %v1055_v11, 1 }
 0x335   :  { %2714 = vrcp.f32 %v776_v30  ;;  %v2713_v39 = vpop.eup %2712  ;;  %v789_v2 = vadd.f32 1.0, %v2711_v1  ;;  %v1097_v30 = vld [vmem:[#allocation5 + $0xf0] sm:$0xff]  ;;  %v811_v1 = vld [vmem:[#allocation2 + $0x60] sm:$0xff] }
 0x336   :  { %2716 = vrcp.f32 %v782_v19  ;;  %v3322_v19 = vpack.c.bf16 %v1097_v30, %v1093_v21 }
 0x337   :  { %2718 = vrcp.f32 %v789_v2 }
 0x33f   :  { %v2715_v48 = vpop.eup %2714 }
 0x340   :  { %v2717_v55 = vpop.eup %2716  ;;  %v793_v4 = vmul.f32 %v2715_v48, %v2713_v39  ;;  %v812_v39 = vld [vmem:[#allocation2 + $0x68] sm:$0xff] }
 0x341   :  { %v792_v6 = vmul.f32 %v2717_v55, %v3186_v12  ;;  %v2719_v22 = vpop.eup %2718 }
 0x343   :  { %v794_v14 = vadd.f32 %v793_v4, %v792_v6 }
 0x345   :  { %2720 = vtanh.f32 %v794_v14  ;;  %v3277_v5 = vsel %vm804_vm10, %v794_v14, %v3186_v12  ;;  %v1070_v12 = vld [vmem:[#allocation5 + $0x18] sm:$0xff] }
 0x34f   :  { %v2721_v24 = vpop.eup %2720 }
 0x350   :  { %v796_v25 = vmul.f32 %v2721_v24, %v2719_v22  ;;  %v814_v24 = vld [vmem:[#allocation2 + $0x78] sm:$0xff] }
 0x352   :  { %v3280_v29 = vsel %vm804_vm10, %v796_v25, %v3189_v20  ;;  %v807_v34 = vsel %vm804_vm10, %v796_v25, 0.0  ;;  %v1074_v20 = vld [vmem:[#allocation5 + $0x38] sm:$0xff] }
 0x353   :  { %809 = vst [vmem:[#allocation7 + $0x10] sm:$0xff] %v807_v34  ;;  %944 = vmatmul.mubr.f32.vlgmr.msra.gmra.mrb[6].mxu0 %v3280_v29  ;;  %1015 = vmatmul.mubr.f32.vlgmr.msra.gmra.mrb[6].mxu1 %v3280_v29  ;;  %v3302_v38 = vpack.c.bf16 %v1074_v20, %v1070_v12  ;;  %v813_v34 = vld [vmem:[#allocation2 + $0x70] sm:$0xff] }
 0x354   :  { %2408 = vmatpush1.bf16.msra.mxu0 %v3204_v33  ;;  %1195 = vmatprep.mubr.f32.mxu0 %v2926_v0 }
 0x355   :  { %2410 = vmatprep.subr.bf16.mxu0 %v3208_v46  ;;  %1266 = vmatprep.mubr.f32.mxu1 %v2926_v0 }
 0x356   :  { %2438 = vmatprep.subr.bf16.mxu1 %v3302_v38 }
 0x357   :  { %2440 = vmatpush1.bf16.msra.mxu1 %v3304_v42 }
 0x358   :  { %2412 = vmatpush1.bf16.msra.mxu0 %v3210_v35  ;;  %2442 = vmatprep.subr.bf16.mxu1 %v3308_v57 }
 0x359   :  { %2414 = vmatprep.subr.bf16.mxu0 %v3213_v41 }
 0x35b   :  { %2444 = vmatpush1.bf16.msra.mxu1 %v3310_v9 }
 0x35c   :  { %2416 = vmatpush1.bf16.msra.mxu0 %v3216_v52  ;;  %2446 = vmatprep.subr.bf16.mxu1 %v3314_v23 }
 0x35d   :  { %2418 = vmatprep.subr.bf16.mxu0 %v3219_v54 }
 0x35f   :  { %2448 = vmatpush1.bf16.msra.mxu1 %v3316_v56 }
 0x360   :  { %2420 = vmatpush1.bf16.msra.mxu0 %v3222_v60  ;;  %2450 = vmatprep.subr.bf16.mxu1 %v3320_v13 }
 0x361   :  { %2422 = vmatprep.subr.bf16.mxu0 %v3226_v15 }
 0x363   :  { %2452 = vmatpush1.bf16.msra.mxu1 %v3322_v19 }
 0x364   :  { %2424 = vmatpush1.bf16.msra.mxu0 %v3230_v43  ;;  %2454 = vmatprep.subr.bf16.mxu1 %v3228_v31 }
 0x365   :  { %2426 = vmatprep.subr.bf16.mxu0 %v3238_v17 }
 0x367   :  { %2456 = vmatpush1.bf16.msra.mxu1 %v3233_v59 }
 0x368   :  { %2428 = vmatpush1.bf16.msra.mxu0 %v3242_v36  ;;  %2458 = vmatprep.subr.bf16.mxu1 %v3240_v32 }
 0x369   :  { %2430 = vmatprep.subr.bf16.mxu0 %v3250_v62 }
 0x36b   :  { %2460 = vmatpush1.bf16.msra.mxu1 %v3245_v45 }
 0x36c   :  { %2432 = vmatpush1.bf16.msra.mxu0 %v3254_v8  ;;  %2462 = vmatprep.subr.bf16.mxu1 %v3252_v7 }
 0x36d   :  { %2434 = vmatprep.subr.bf16.mxu0 %v3262_v26 }
 0x36f   :  { %2464 = vmatpush1.bf16.msra.mxu1 %v3257_v16 }
 0x370   :  { %2436 = vmatpush1.bf16.msra.mxu0 %v3266_v53  ;;  %2466 = vmatprep.subr.bf16.mxu1 %v3264_v49 }
 0x371   :  { %2470 = vmatprep.subr.bf16.mxu0 %v3202_v28 }
 0x373   :  { %2468 = vmatpush1.bf16.msra.mxu1 %v3269_v40 }
 0x374   :  { %2502 = vmatprep.subr.bf16.mxu1 %v3302_v38 }
 0x426   :  { %v945_v48 = vpop.f32.mrb[6].mxu0  ;;  %v1016_v51 = vpop.f32.mrb[6].mxu1 }
 0x427   :  { %v1021_v55 = vadd.f32 %v945_v48, %v811_v1  ;;  %v947_v2 = vpop.f32.mrb[7].mxu0  ;;  %v1018_v4 = vpop.f32.mrb[7].mxu1  ;;  %v1023_v20 = vadd.f32 %v1016_v51, %v813_v34 }
 0x428   :  { %v1022_v6 = vadd.f32 %v947_v2, %v812_v39  ;;  %v1024_v25 = vadd.f32 %v1018_v4, %v814_v24 }
 0x429   :  { %v2129_v14 = vmul.f32 -1.442695, %v1021_v55 }
 0x42a   :  { %v2130_v22 = vmul.f32 -1.442695, %v1022_v6  ;;  %v2131_v12 = vmul.f32 -1.442695, %v1024_v25 }
 0x42b   :  { %2722 = vpow2.f32 %v2129_v14 }
 0x42c   :  { %2724 = vpow2.f32 %v2130_v22 }
 0x42d   :  { %2726 = vpow2.f32 %v2131_v12  ;;  %v1066_v12 = vld [vmem:[#allocation2 + $0x98] sm:$0xff] }
 0x42e   :  { %2728 = vtanh.f32 %v1023_v20 }
 0x435   :  { %v2723_v63 = vpop.eup %2722 }
 0x436   :  { %v2725_v37 = vpop.eup %2724  ;;  %v1028_v44 = vadd.f32 1.0, %v2723_v63  ;;  %v1065_v63 = vld [vmem:[#allocation2 + $0x90] sm:$0xff] }
 0x437   :  { %v1034_v50 = vadd.f32 1.0, %v2725_v37  ;;  %v2727_v58 = vpop.eup %2726 }
 0x438   :  { %2730 = vrcp.f32 %v1028_v44  ;;  %v2729_v61 = vpop.eup %2728  ;;  %v1041_v47 = vadd.f32 1.0, %v2727_v58 }
 0x439   :  { %2732 = vrcp.f32 %v1034_v50 }
 0x43a   :  { %2734 = vrcp.f32 %v1041_v47 }
 0x442   :  { %v2731_v10 = vpop.eup %2730 }
 0x443   :  { %v2733_v18 = vpop.eup %2732  ;;  %v1045_v27 = vmul.f32 %v2731_v10, %v2729_v61 }
 0x444   :  { %v1044_v3 = vmul.f32 %v2733_v18, %v3277_v5  ;;  %v2735_v1 = vpop.eup %2734 }
 0x446   :  { %v1046_v21 = vadd.f32 %v1045_v27, %v1044_v3 }
 0x448   :  { %2736 = vtanh.f32 %v1046_v21  ;;  %v3337_v30 = vsel %vm1056_vm11, %v1046_v21, %v3277_v5  ;;  %v1063_v5 = vld [vmem:[#allocation2 + $0x80] sm:$0xff] }
 0x452   :  { %v2737_v39 = vpop.eup %2736 }
 0x453   :  { %v1048_v48 = vmul.f32 %v2737_v39, %v2735_v1  ;;  %v1307_v1 = vpop.permute.xlu0 %1306 }
 0x454   :  { %vm1308_vm12 = vcmp.eq.s32.totalorder %v1307_v1, 1  ;;  %v1851_v1 = vld [vmem:[#allocation5 + $0xe0] sm:$0xff] }
 0x455   :  { %v3340_v51 = vsel %vm1056_vm11, %v1048_v48, %v3280_v29  ;;  %v1059_v55 = vsel %vm1056_vm11, %v1048_v48, 0.0  ;;  %v1064_v29 = vld [vmem:[#allocation2 + $0x88] sm:$0xff] }
 0x456   :  { %1061 = vst [vmem:[#allocation7 + $0x18] sm:$0xff] %v1059_v55  ;;  %1196 = vmatmul.mubr.f32.vlgmr.msra.gmra.mrb[8].mxu0 %v3340_v51  ;;  %1267 = vmatmul.mubr.f32.vlgmr.msra.gmra.mrb[8].mxu1 %v3340_v51 }
 0x457   :  { %2472 = vmatpush1.bf16.msra.mxu0 %v3204_v33  ;;  %2504 = vmatpush1.bf16.msra.mxu1 %v3304_v42 }
 0x458   :  { %2474 = vmatprep.subr.bf16.mxu0 %v3208_v46  ;;  %2506 = vmatprep.subr.bf16.mxu1 %v3308_v57 }
 0x459   :  { %1447 = vmatprep.mubr.f32.mxu0 %v2926_v0  ;;  %1518 = vmatprep.mubr.f32.mxu1 %v2926_v0 }
 0x45b   :  { %2476 = vmatpush1.bf16.msra.mxu0 %v3210_v35  ;;  %2508 = vmatpush1.bf16.msra.mxu1 %v3310_v9 }
 0x45c   :  { %2478 = vmatprep.subr.bf16.mxu0 %v3213_v41  ;;  %2510 = vmatprep.subr.bf16.mxu1 %v3314_v23 }
 0x45f   :  { %2480 = vmatpush1.bf16.msra.mxu0 %v3216_v52  ;;  %2512 = vmatpush1.bf16.msra.mxu1 %v3316_v56 }
 0x460   :  { %2482 = vmatprep.subr.bf16.mxu0 %v3219_v54  ;;  %2514 = vmatprep.subr.bf16.mxu1 %v3320_v13 }
 0x463   :  { %2484 = vmatpush1.bf16.msra.mxu0 %v3222_v60  ;;  %2516 = vmatpush1.bf16.msra.mxu1 %v3322_v19 }
 0x464   :  { %2486 = vmatprep.subr.bf16.mxu0 %v3226_v15  ;;  %2518 = vmatprep.subr.bf16.mxu1 %v3228_v31 }
 0x467   :  { %2488 = vmatpush1.bf16.msra.mxu0 %v3230_v43  ;;  %2520 = vmatpush1.bf16.msra.mxu1 %v3233_v59 }
 0x468   :  { %2490 = vmatprep.subr.bf16.mxu0 %v3238_v17  ;;  %2522 = vmatprep.subr.bf16.mxu1 %v3240_v32 }
 0x46b   :  { %2492 = vmatpush1.bf16.msra.mxu0 %v3242_v36  ;;  %2524 = vmatpush1.bf16.msra.mxu1 %v3245_v45 }
 0x46c   :  { %2494 = vmatprep.subr.bf16.mxu0 %v3250_v62  ;;  %2526 = vmatprep.subr.bf16.mxu1 %v3252_v7 }
 0x46f   :  { %2496 = vmatpush1.bf16.msra.mxu0 %v3254_v8  ;;  %2528 = vmatpush1.bf16.msra.mxu1 %v3257_v16 }
 0x470   :  { %2498 = vmatprep.subr.bf16.mxu0 %v3262_v26  ;;  %2530 = vmatprep.subr.bf16.mxu1 %v3264_v49 }
 0x473   :  { %2500 = vmatpush1.bf16.msra.mxu0 %v3266_v53  ;;  %2532 = vmatpush1.bf16.msra.mxu1 %v3269_v40 }
 0x474   :  { %2534 = vmatprep.subr.bf16.mxu0 %v3202_v28  ;;  %2566 = vmatprep.subr.bf16.mxu1 %v3302_v38 }
 0x529   :  { %v1197_v2 = vpop.f32.mrb[8].mxu0  ;;  %v1268_v4 = vpop.f32.mrb[8].mxu1 }
 0x52a   :  { %v1273_v6 = vadd.f32 %v1197_v2, %v1063_v5  ;;  %v1199_v14 = vpop.f32.mrb[9].mxu0  ;;  %v1270_v22 = vpop.f32.mrb[9].mxu1  ;;  %v1275_v44 = vadd.f32 %v1268_v4, %v1065_v63  ;;  %v1824_v63 = vld [vmem:[#allocation5 + $0x8] sm:$0xff] }
 0x52b   :  { %v1274_v24 = vadd.f32 %v1199_v14, %v1064_v29  ;;  %v1276_v20 = vadd.f32 %v1270_v22, %v1066_v12 }
 0x52c   :  { %v2133_v25 = vmul.f32 -1.442695, %v1273_v6  ;;  %v1559_v6 = vpop.permute.xlu1 %1558 }
 0x52d   :  { %v2134_v34 = vmul.f32 -1.442695, %v1274_v24  ;;  %v2135_v37 = vmul.f32 -1.442695, %v1276_v20  ;;  %vm1560_vm13 = vcmp.eq.s32.totalorder %v1559_v6, 1  ;;  %v1873_v6 = vld [vmem:[#allocation5 + $0x190] sm:$0xff] }
 0x52e   :  { %2738 = vpow2.f32 %v2133_v25 }
 0x52f   :  { %2740 = vpow2.f32 %v2134_v34 }
 0x530   :  { %2742 = vpow2.f32 %v2135_v37  ;;  %v1828_v37 = vld [vmem:[#allocation5 + $0x28] sm:$0xff] }
 0x531   :  { %2744 = vtanh.f32 %v1275_v44  ;;  %v2597_v44 = vpack.c.bf16 %v1828_v37, %v1824_v63 }
 0x538   :  { %v2739_v28 = vpop.eup %2738 }
 0x539   :  { %v2741_v50 = vpop.eup %2740  ;;  %v1280_v58 = vadd.f32 1.0, %v2739_v28  ;;  %v1827_v28 = vld [vmem:[#allocation5 + $0x20] sm:$0xff] }
 0x53a   :  { %v1286_v61 = vadd.f32 1.0, %v2741_v50  ;;  %v2743_v10 = vpop.eup %2742 }
 0x53b   :  { %2746 = vrcp.f32 %v1280_v58  ;;  %v2745_v18 = vpop.eup %2744  ;;  %v1293_v11 = vadd.f32 1.0, %v2743_v10 }
 0x53c   :  { %2748 = vrcp.f32 %v1286_v61  ;;  %v1835_v61 = vld [vmem:[#allocation5 + $0x60] sm:$0xff] }
 0x53d   :  { %2750 = vrcp.f32 %v1293_v11 }
 0x545   :  { %v2747_v27 = vpop.eup %2746 }
 0x546   :  { %v2749_v47 = vpop.eup %2748  ;;  %v1297_v3 = vmul.f32 %v2747_v27, %v2745_v18  ;;  %v1843_v18 = vld [vmem:[#allocation5 + $0xa0] sm:$0xff] }
 0x547   :  { %v1296_v21 = vmul.f32 %v2749_v47, %v3337_v30  ;;  %v2751_v55 = vpop.eup %2750  ;;  %v1848_v47 = vld [vmem:[#allocation5 + $0xc8] sm:$0xff] }
 0x549   :  { %v1298_v39 = vadd.f32 %v1297_v3, %v1296_v21  ;;  %v1852_v3 = vld [vmem:[#allocation5 + $0xe8] sm:$0xff]  ;;  %v1847_v21 = vld [vmem:[#allocation5 + $0xc0] sm:$0xff] }
 0x54a   :  { %v2609_v11 = vpack.c.bf16 %v1852_v3, %v1848_v47 }
 0x54b   :  { %2752 = vtanh.f32 %v1298_v39  ;;  %v3380_v48 = vsel %vm1308_vm12, %v1298_v39, %v3337_v30  ;;  %v2611_v39 = vpack.c.bf16 %v1851_v1, %v1847_v21  ;;  %v1569_v1 = vld [vmem:[#allocation2 + $0xd0] sm:$0xff] }
 0x555   :  { %v2753_v5 = vpop.eup %2752 }
 0x556   :  { %v1300_v29 = vmul.f32 %v2753_v5, %v2751_v55  ;;  %v1860_v55 = vld [vmem:[#allocation5 + $0x128] sm:$0xff]  ;;  %v1858_v5 = vld [vmem:[#allocation5 + $0x118] sm:$0xff] }
 0x558   :  { %v3383_v2 = vsel %vm1308_vm12, %v1300_v29, %v3340_v51  ;;  %v1311_v4 = vsel %vm1308_vm12, %v1300_v29, 0.0 }
 0x559   :  { %1313 = vst [vmem:[#allocation7 + $0x20] sm:$0xff] %v1311_v4  ;;  %1448 = vmatmul.mubr.f32.vlgmr.msra.gmra.mrb[10].mxu0 %v3383_v2  ;;  %1519 = vmatmul.mubr.f32.vlgmr.msra.gmra.mrb[10].mxu1 %v3383_v2  ;;  %v1855_v4 = vld [vmem:[#allocation5 + $0x100] sm:$0xff] }
 0x55a   :  { %2536 = vmatpush1.bf16.msra.mxu0 %v3204_v33  ;;  %2568 = vmatpush1.bf16.msra.mxu1 %v3304_v42  ;;  %v1315_v33 = vld [vmem:[#allocation2 + $0xa0] sm:$0xff] }
 0x55b   :  { %2538 = vmatprep.subr.bf16.mxu0 %v3208_v46  ;;  %2570 = vmatprep.subr.bf16.mxu1 %v3308_v57  ;;  %v1316_v46 = vld [vmem:[#allocation2 + $0xa8] sm:$0xff] }
 0x55c   :  { %1699 = vmatprep.mubr.f32.mxu0 %v2926_v0  ;;  %1770 = vmatprep.mubr.f32.mxu1 %v2926_v0 }
 0x55e   :  { %2540 = vmatpush1.bf16.msra.mxu0 %v3210_v35  ;;  %2572 = vmatpush1.bf16.msra.mxu1 %v3310_v9 }
 0x55f   :  { %2542 = vmatprep.subr.bf16.mxu0 %v3213_v41  ;;  %2574 = vmatprep.subr.bf16.mxu1 %v3314_v23 }
 0x562   :  { %2544 = vmatpush1.bf16.msra.mxu0 %v3216_v52  ;;  %2576 = vmatpush1.bf16.msra.mxu1 %v3316_v56 }
 0x563   :  { %2546 = vmatprep.subr.bf16.mxu0 %v3219_v54  ;;  %2578 = vmatprep.subr.bf16.mxu1 %v3320_v13 }
 0x566   :  { %2548 = vmatpush1.bf16.msra.mxu0 %v3222_v60  ;;  %2580 = vmatpush1.bf16.msra.mxu1 %v3322_v19 }
 0x567   :  { %2550 = vmatprep.subr.bf16.mxu0 %v3226_v15  ;;  %2582 = vmatprep.subr.bf16.mxu1 %v3228_v31 }
 0x56a   :  { %2552 = vmatpush1.bf16.msra.mxu0 %v3230_v43  ;;  %2584 = vmatpush1.bf16.msra.mxu1 %v3233_v59  ;;  %v1318_v59 = vld [vmem:[#allocation2 + $0xb8] sm:$0xff] }
 0x56b   :  { %2554 = vmatprep.subr.bf16.mxu0 %v3238_v17  ;;  %2586 = vmatprep.subr.bf16.mxu1 %v3240_v32  ;;  %v1317_v32 = vld [vmem:[#allocation2 + $0xb0] sm:$0xff] }
 0x56e   :  { %2556 = vmatpush1.bf16.msra.mxu0 %v3242_v36  ;;  %2588 = vmatpush1.bf16.msra.mxu1 %v3245_v45 }
 0x56f   :  { %2558 = vmatprep.subr.bf16.mxu0 %v3250_v62  ;;  %2590 = vmatprep.subr.bf16.mxu1 %v3252_v7 }
 0x572   :  { %2560 = vmatpush1.bf16.msra.mxu0 %v3254_v8  ;;  %2592 = vmatpush1.bf16.msra.mxu1 %v3257_v16 }
 0x573   :  { %2562 = vmatprep.subr.bf16.mxu0 %v3262_v26  ;;  %2594 = vmatprep.subr.bf16.mxu1 %v3264_v49 }
 0x576   :  { %2564 = vmatpush1.bf16.msra.mxu0 %v3266_v53  ;;  %2596 = vmatpush1.bf16.msra.mxu1 %v3269_v40 }
 0x577   :  { %2630 = vmatprep.subr.bf16.mxu1 %v3302_v38  ;;  %2598 = vmatprep.subr.bf16.mxu0 %v2597_v44  ;;  %v1886_v44 = vld [vmem:[#allocation5 + $0x1f8] sm:$0xff] }
 0x62c   :  { %v1449_v35 = vpop.f32.mrb[10].mxu0  ;;  %v1520_v41 = vpop.f32.mrb[10].mxu1 }
 0x62d   :  { %v1525_v52 = vadd.f32 %v1449_v35, %v1315_v33  ;;  %v1451_v54 = vpop.f32.mrb[11].mxu0  ;;  %v1522_v60 = vpop.f32.mrb[11].mxu1  ;;  %v1527_v45 = vadd.f32 %v1520_v41, %v1317_v32  ;;  %v1859_v33 = vld [vmem:[#allocation5 + $0x120] sm:$0xff]  ;;  %v1857_v41 = vld [vmem:[#allocation5 + $0x110] sm:$0xff] }
 0x62e   :  { %v1526_v15 = vadd.f32 %v1451_v54, %v1316_v46  ;;  %v1528_v17 = vadd.f32 %v1522_v60, %v1318_v59  ;;  %v2615_v35 = vpack.c.bf16 %v1859_v33, %v1855_v4  ;;  %v1864_v54 = vld [vmem:[#allocation5 + $0x148] sm:$0xff]  ;;  %v1863_v32 = vld [vmem:[#allocation5 + $0x140] sm:$0xff] }
 0x62f   :  { %v2137_v31 = vmul.f32 -1.442695, %v1525_v52  ;;  %v1861_v52 = vld [vmem:[#allocation5 + $0x130] sm:$0xff] }
 0x630   :  { %v2138_v43 = vmul.f32 -1.442695, %v1526_v15  ;;  %v2139_v36 = vmul.f32 -1.442695, %v1528_v17  ;;  %v2647_v60 = vpack.c.bf16 %v1861_v52, %v1857_v41  ;;  %v1868_v15 = vld [vmem:[#allocation5 + $0x168] sm:$0xff] }
 0x631   :  { %2754 = vpow2.f32 %v2137_v31  ;;  %v1866_v31 = vld [vmem:[#allocation5 + $0x158] sm:$0xff]  ;;  %v2617_v59 = vpack.c.bf16 %v1868_v15, %v1864_v54  ;;  %v1811_v54 = vpop.permute.xlu0 %1810 }
 0x632   :  { %2756 = vpow2.f32 %v2138_v43  ;;  %v1870_v43 = vld [vmem:[#allocation5 + $0x178] sm:$0xff]  ;;  %vm1812_vm14 = vcmp.eq.s32.totalorder %v1811_v54, 1 }
 0x633   :  { %2758 = vpow2.f32 %v2139_v36  ;;  %v2649_v17 = vpack.c.bf16 %v1870_v43, %v1866_v31  ;;  %v1867_v36 = vld [vmem:[#allocation5 + $0x160] sm:$0xff] }
 0x634   :  { %2760 = vtanh.f32 %v1527_v45  ;;  %v1865_v45 = vld [vmem:[#allocation5 + $0x150] sm:$0xff] }
 0x63b   :  { %v2755_v62 = vpop.eup %2754 }
 0x63c   :  { %v2757_v7 = vpop.eup %2756  ;;  %v1532_v8 = vadd.f32 1.0, %v2755_v62  ;;  %v2619_v62 = vpack.c.bf16 %v1867_v36, %v1863_v32 }
 0x63d   :  { %v1538_v16 = vadd.f32 1.0, %v2757_v7  ;;  %v2759_v26 = vpop.eup %2758  ;;  %v1869_v7 = vld [vmem:[#allocation5 + $0x170] sm:$0xff] }
 0x63e   :  { %2762 = vrcp.f32 %v1532_v8  ;;  %v2761_v49 = vpop.eup %2760  ;;  %v1545_v30 = vadd.f32 1.0, %v2759_v26  ;;  %v1872_v8 = vld [vmem:[#allocation5 + $0x188] sm:$0xff]  ;;  %v2651_v26 = vpack.c.bf16 %v1869_v7, %v1865_v45  ;;  %v1819_v45 = vld [vmem:[#allocation2 + $0xe0] sm:$0xff] }
 0x63f   :  { %2764 = vrcp.f32 %v1538_v16  ;;  %v1876_v16 = vld [vmem:[#allocation5 + $0x1a8] sm:$0xff] }
 0x640   :  { %2766 = vrcp.f32 %v1545_v30 }
 0x648   :  { %v2763_v53 = vpop.eup %2762 }
 0x649   :  { %v2765_v40 = vpop.eup %2764  ;;  %v1549_v38 = vmul.f32 %v2763_v53, %v2761_v49  ;;  %v2621_v49 = vpack.c.bf16 %v1876_v16, %v1872_v8  ;;  %v1874_v53 = vld [vmem:[#allocation5 + $0x198] sm:$0xff] }
 0x64a   :  { %v1548_v51 = vmul.f32 %v2765_v40, %v3380_v48  ;;  %v2767_v24 = vpop.eup %2766  ;;  %v1878_v40 = vld [vmem:[#allocation5 + $0x1b8] sm:$0xff] }
 0x64b   :  { %v2653_v30 = vpack.c.bf16 %v1878_v40, %v1874_v53 }
 0x64c   :  { %v1550_v14 = vadd.f32 %v1549_v38, %v1548_v51  ;;  %v1871_v38 = vld [vmem:[#allocation5 + $0x180] sm:$0xff] }
 0x64d   :  { %v1875_v51 = vld [vmem:[#allocation5 + $0x1a0] sm:$0xff] }
 0x64e   :  { %2768 = vtanh.f32 %v1550_v14  ;;  %v3422_v22 = vsel %vm1560_vm13, %v1550_v14, %v3380_v48  ;;  %v1856_v48 = vld [vmem:[#allocation5 + $0x108] sm:$0xff]  ;;  %v1877_v14 = vld [vmem:[#allocation5 + $0x1b0] sm:$0xff] }
 0x64f   :  { %v2613_v29 = vpack.c.bf16 %v1860_v55, %v1856_v48  ;;  %v2655_v63 = vpack.c.bf16 %v1877_v14, %v1873_v6 }
 0x658   :  { %v2769_v25 = vpop.eup %2768 }
 0x659   :  { %v1552_v34 = vmul.f32 %v2769_v25, %v2767_v24  ;;  %v2623_v24 = vpack.c.bf16 %v1875_v51, %v1871_v38  ;;  %v1880_v25 = vld [vmem:[#allocation5 + $0x1c8] sm:$0xff]  ;;  %v1821_v51 = vld [vmem:[#allocation2 + $0xf0] sm:$0xff] }
 0x65b   :  { %v3425_v12 = vsel %vm1560_vm13, %v1552_v34, %v3383_v2  ;;  %v1563_v20 = vsel %vm1560_vm13, %v1552_v34, 0.0  ;;  %v1862_v2 = vld [vmem:[#allocation5 + $0x138] sm:$0xff]  ;;  %v1884_v34 = vld [vmem:[#allocation5 + $0x1e8] sm:$0xff] }
 0x65c   :  { %1565 = vst [vmem:[#allocation7 + $0x28] sm:$0xff] %v1563_v20  ;;  %1700 = vmatmul.mubr.f32.vlgmr.msra.gmra.mrb[12].mxu0 %v3425_v12  ;;  %1771 = vmatmul.mubr.f32.vlgmr.msra.gmra.mrb[12].mxu1 %v3425_v12  ;;  %v2645_v46 = vpack.c.bf16 %v1862_v2, %v1858_v5  ;;  %v1882_v20 = vld [vmem:[#allocation5 + $0x1d8] sm:$0xff]  ;;  %v2625_v37 = vpack.c.bf16 %v1884_v34, %v1880_v25 }
 0x65d   :  { %2632 = vmatpush1.bf16.msra.mxu1 %v3304_v42  ;;  %1951 = vmatprep.mubr.f32.mxu0 %v2926_v0  ;;  %v1823_v42 = vld [vmem:[#allocation5] sm:$0xff] }
 0x65e   :  { %2634 = vmatprep.subr.bf16.mxu1 %v3308_v57  ;;  %2022 = vmatprep.mubr.f32.mxu1 %v2926_v0  ;;  %v2599_v50 = vpack.c.bf16 %v1827_v28, %v1823_v42  ;;  %v1832_v57 = vld [vmem:[#allocation5 + $0x48] sm:$0xff]  ;;  %v1879_v42 = vld [vmem:[#allocation5 + $0x1c0] sm:$0xff] }
 0x65f   :  { %v1836_v0 = vld [vmem:[#allocation5 + $0x68] sm:$0xff]  ;;  %v1883_v28 = vld [vmem:[#allocation5 + $0x1e0] sm:$0xff] }
 0x660   :  { %2600 = vmatpush1.bf16.msra.mxu0 %v2599_v50  ;;  %v2601_v58 = vpack.c.bf16 %v1836_v0, %v1832_v57  ;;  %v2657_v50 = vpack.c.bf16 %v1886_v44, %v1882_v20  ;;  %v1881_v57 = vld [vmem:[#allocation5 + $0x1d0] sm:$0xff] }
 0x661   :  { %2636 = vmatpush1.bf16.msra.mxu1 %v3310_v9  ;;  %v1831_v9 = vld [vmem:[#allocation5 + $0x40] sm:$0xff]  ;;  %v1885_v0 = vld [vmem:[#allocation5 + $0x1f0] sm:$0xff] }
 0x662   :  { %2638 = vmatprep.subr.bf16.mxu1 %v3314_v23  ;;  %v2603_v23 = vpack.c.bf16 %v1835_v61, %v1831_v9  ;;  %2602 = vmatprep.subr.bf16.mxu0 %v2601_v58  ;;  %v2627_v58 = vpack.c.bf16 %v1883_v28, %v1879_v42  ;;  %v2659_v9 = vpack.c.bf16 %v1885_v0, %v1881_v57  ;;  %v1567_v61 = vld [vmem:[#allocation2 + $0xc0] sm:$0xff] }
 0x664   :  { %2604 = vmatpush1.bf16.msra.mxu0 %v2603_v23  ;;  %v1568_v23 = vld [vmem:[#allocation2 + $0xc8] sm:$0xff] }
 0x665   :  { %2640 = vmatpush1.bf16.msra.mxu1 %v3316_v56  ;;  %v1840_v56 = vld [vmem:[#allocation5 + $0x88] sm:$0xff] }
 0x666   :  { %2642 = vmatprep.subr.bf16.mxu1 %v3320_v13  ;;  %v1844_v13 = vld [vmem:[#allocation5 + $0xa8] sm:$0xff] }
 0x667   :  { %v2605_v10 = vpack.c.bf16 %v1844_v13, %v1840_v56 }
 0x669   :  { %2644 = vmatpush1.bf16.msra.mxu1 %v3322_v19  ;;  %v1839_v19 = vld [vmem:[#allocation5 + $0x80] sm:$0xff]  ;;  %2606 = vmatprep.subr.bf16.mxu0 %v2605_v10 }
 0x66a   :  { %v2607_v27 = vpack.c.bf16 %v1843_v18, %v1839_v19  ;;  %2646 = vmatprep.subr.bf16.mxu1 %v2645_v46 }
 0x66c   :  { %2608 = vmatpush1.bf16.msra.mxu0 %v2607_v27 }
 0x66d   :  { %2610 = vmatprep.subr.bf16.mxu0 %v2609_v11  ;;  %2648 = vmatpush1.bf16.msra.mxu1 %v2647_v60  ;;  %v1570_v11 = vld [vmem:[#allocation2 + $0xd8] sm:$0xff] }
 0x66e   :  { %2650 = vmatprep.subr.bf16.mxu1 %v2649_v17 }
 0x670   :  { %2612 = vmatpush1.bf16.msra.mxu0 %v2611_v39 }
 0x671   :  { %2614 = vmatprep.subr.bf16.mxu0 %v2613_v29  ;;  %2652 = vmatpush1.bf16.msra.mxu1 %v2651_v26 }
 0x672   :  { %2654 = vmatprep.subr.bf16.mxu1 %v2653_v30 }
 0x674   :  { %2616 = vmatpush1.bf16.msra.mxu0 %v2615_v35 }
 0x675   :  { %2618 = vmatprep.subr.bf16.mxu0 %v2617_v59  ;;  %2656 = vmatpush1.bf16.msra.mxu1 %v2655_v63 }
 0x676   :  { %2658 = vmatprep.subr.bf16.mxu1 %v2657_v50  ;;  %v2063_v50 = vpop.permute.xlu1 %2062 }
 0x677   :  { %vm2064_vm15 = vcmp.eq.s32.totalorder %v2063_v50, 1 }
 0x678   :  { %2620 = vmatpush1.bf16.msra.mxu0 %v2619_v62  ;;  %v1820_v62 = vld [vmem:[#allocation2 + $0xe8] sm:$0xff] }
 0x679   :  { %2622 = vmatprep.subr.bf16.mxu0 %v2621_v49  ;;  %2660 = vmatpush1.bf16.msra.mxu1 %v2659_v9 }
 0x67c   :  { %2624 = vmatpush1.bf16.msra.mxu0 %v2623_v24 }
 0x67d   :  { %2626 = vmatprep.subr.bf16.mxu0 %v2625_v37 }
 0x680   :  { %2628 = vmatpush1.bf16.msra.mxu0 %v2627_v58 }
 0x72f   :  { %v1701_v56 = vpop.f32.mrb[12].mxu0  ;;  %v1772_v13 = vpop.f32.mrb[12].mxu1 }
 0x730   :  { %v1777_v10 = vadd.f32 %v1701_v56, %v1567_v61  ;;  %v1703_v19 = vpop.f32.mrb[13].mxu0  ;;  %v1774_v18 = vpop.f32.mrb[13].mxu1  ;;  %v1779_v48 = vadd.f32 %v1772_v13, %v1569_v1 }
 0x731   :  { %v1778_v27 = vadd.f32 %v1703_v19, %v1568_v23  ;;  %v1780_v21 = vadd.f32 %v1774_v18, %v1570_v11 }
 0x732   :  { %v2141_v47 = vmul.f32 -1.442695, %v1777_v10 }
 0x733   :  { %v2142_v3 = vmul.f32 -1.442695, %v1778_v27  ;;  %v2143_v39 = vmul.f32 -1.442695, %v1780_v21 }
 0x734   :  { %2770 = vpow2.f32 %v2141_v47 }
 0x735   :  { %2772 = vpow2.f32 %v2142_v3 }
 0x736   :  { %2774 = vpow2.f32 %v2143_v39 }
 0x737   :  { %2776 = vtanh.f32 %v1779_v48 }
 0x73e   :  { %v2771_v55 = vpop.eup %2770 }
 0x73f   :  { %v2773_v5 = vpop.eup %2772  ;;  %v1784_v29 = vadd.f32 1.0, %v2771_v55 }
 0x740   :  { %v1790_v2 = vadd.f32 1.0, %v2773_v5  ;;  %v2775_v4 = vpop.eup %2774 }
 0x741   :  { %2778 = vrcp.f32 %v1784_v29  ;;  %v2777_v33 = vpop.eup %2776  ;;  %v1797_v52 = vadd.f32 1.0, %v2775_v4 }
 0x742   :  { %2780 = vrcp.f32 %v1790_v2 }
 0x743   :  { %2782 = vrcp.f32 %v1797_v52 }
 0x74b   :  { %v2779_v46 = vpop.eup %2778 }
 0x74c   :  { %v2781_v35 = vpop.eup %2780  ;;  %v1801_v41 = vmul.f32 %v2779_v46, %v2777_v33 }
 0x74d   :  { %v1800_v60 = vmul.f32 %v2781_v35, %v3422_v22  ;;  %v2783_v43 = vpop.eup %2782 }
 0x74f   :  { %v1802_v15 = vadd.f32 %v1801_v41, %v1800_v60 }
 0x751   :  { %2784 = vtanh.f32 %v1802_v15  ;;  %v1814_v31 = vsel %vm1812_vm14, %v1802_v15, %v3422_v22  ;;  %v1822_v22 = vld [vmem:[#allocation2 + $0xf8] sm:$0xff] }
 0x75b   :  { %v2785_v59 = vpop.eup %2784 }
 0x75c   :  { %v1804_v17 = vmul.f32 %v2785_v59, %v2783_v43 }
 0x75e   :  { %v1813_v32 = vsel %vm1812_vm14, %v1804_v17, %v3425_v12  ;;  %v1815_v36 = vsel %vm1812_vm14, %v1804_v17, 0.0 }
 0x75f   :  { %1817 = vst [vmem:[#allocation7 + $0x30] sm:$0xff] %v1815_v36  ;;  %1952 = vmatmul.mubr.f32.vlgmr.msra.gmra.mrb[14].mxu0 %v1813_v32  ;;  %2023 = vmatmul.mubr.f32.vlgmr.msra.gmra.mrb[14].mxu1 %v1813_v32 }
 0x832   :  { %v1953_v7 = vpop.f32.mrb[14].mxu0  ;;  %v2024_v8 = vpop.f32.mrb[14].mxu1 }
 0x833   :  { %v2029_v16 = vadd.f32 %v1953_v7, %v1819_v45  ;;  %v1955_v26 = vpop.f32.mrb[15].mxu0  ;;  %v2026_v49 = vpop.f32.mrb[15].mxu1  ;;  %v2031_v6 = vadd.f32 %v2024_v8, %v1821_v51 }
 0x834   :  { %v2030_v53 = vadd.f32 %v1955_v26, %v1820_v62  ;;  %v2032_v30 = vadd.f32 %v2026_v49, %v1822_v22 }
 0x835   :  { %v2145_v40 = vmul.f32 -1.442695, %v2029_v16 }
 0x836   :  { %v2146_v38 = vmul.f32 -1.442695, %v2030_v53  ;;  %v2147_v12 = vmul.f32 -1.442695, %v2032_v30 }
 0x837   :  { %2786 = vpow2.f32 %v2145_v40 }
 0x838   :  { %2788 = vpow2.f32 %v2146_v38 }
 0x839   :  { %2790 = vpow2.f32 %v2147_v12 }
 0x83a   :  { %2792 = vtanh.f32 %v2031_v6 }
 0x841   :  { %v2787_v14 = vpop.eup %2786 }
 0x842   :  { %v2789_v24 = vpop.eup %2788  ;;  %v2036_v25 = vadd.f32 1.0, %v2787_v14 }
 0x843   :  { %v2042_v34 = vadd.f32 1.0, %v2789_v24  ;;  %v2791_v20 = vpop.eup %2790 }
 0x844   :  { %2794 = vrcp.f32 %v2036_v25  ;;  %v2793_v63 = vpop.eup %2792  ;;  %v2049_v28 = vadd.f32 1.0, %v2791_v20 }
 0x845   :  { %2796 = vrcp.f32 %v2042_v34 }
 0x846   :  { %2798 = vrcp.f32 %v2049_v28 }
 0x84e   :  { %v2795_v37 = vpop.eup %2794 }
 0x84f   :  { %v2797_v44 = vpop.eup %2796  ;;  %v2053_v42 = vmul.f32 %v2795_v37, %v2793_v63 }
 0x850   :  { %v2052_v57 = vmul.f32 %v2797_v44, %v1814_v31  ;;  %v2799_v9 = vpop.eup %2798 }
 0x852   :  { %v2054_v0 = vadd.f32 %v2053_v42, %v2052_v57 }
 0x854   :  { %2800 = vtanh.f32 %v2054_v0  ;;  %v2066_v58 = vsel %vm2064_vm15, %v2054_v0, %v1814_v31 }
 0x855   :  { %2071 = vst [vmem:[#allocation10] sm:$0xff] %v2066_v58 }
 0x85e   :  { %v2801_v61 = vpop.eup %2800 }
 0x85f   :  { %v2056_v23 = vmul.f32 %v2801_v61, %v2799_v9 }
 0x861   :  { %v2065_v56 = vsel %vm2064_vm15, %v2056_v23, %v1813_v32  ;;  %v2067_v13 = vsel %vm2064_vm15, %v2056_v23, 0.0 }
 0x862   :  { %2069 = vst [vmem:[#allocation7 + $0x38] sm:$0xff] %v2067_v13  ;;  %2070 = vst [vmem:[#allocation8] sm:$0xff] %v2065_v56 }
 0x863   :  { %2859 = shalt.err (!%p2856_p6)
}
 0x864   :  { %s2860_s27 = scalar_lea.hbm %s3498_s4, 128 }
 0x865   :  { %p2861_p7 = scmp.ne.s32.totalorder %s3498_s4, %s2860_s27  ;;  %p2864_p8 = scmp.lt.u32.totalorder %s2860_s27, %s3498_s4 }
 0x867   :  { %p2866_p9 = pnand %p2864_p8, %p2861_p7 }
 0x869   :  { %2869 = shalt.err (!%p2866_p9)
}
 0x86a   :  { %2093 = dma.vmem_to_hbm [thread:$0]  %s2091_s19, 128, %s3498_s4, [#allocation9]  }
 0x86b   :  { %s2870_s9 = scalar_lea.vmem %s3442_s21, 1024  ;;  %p2875_p11 = scmp.lt.s32.totalorder %s3442_s21, %s3442_s21 }
 0x86c   :  { %p2871_p10 = scmp.ne.s32.totalorder %s3442_s21, %s2870_s9  ;;  %p2876_p12 = scmp.lt.s32.totalorder %s2870_s9, %s2870_s9 }
 0x86e   :  { %p2877_p13 = por %p2876_p12, %p2875_p11 }
 0x870   :  { %p2878_p0 = pnand %p2877_p13, %p2871_p10 }
 0x872   :  { %2881 = shalt.err (!%p2878_p0)
}
 0x873   :  { %s2882_s12 = scalar_lea.hbm %s3497_s3, 1024 }
 0x874   :  { %p2883_p1 = scmp.ne.s32.totalorder %s3497_s3, %s2882_s12  ;;  %p2886_p2 = scmp.lt.u32.totalorder %s2882_s12, %s3497_s3 }
 0x876   :  { %p2888_p3 = pnand %p2886_p2, %p2883_p1 }
 0x878   :  { %2891 = shalt.err (!%p2888_p3)
}
 0x879   :  { %s2931_s4 = smov 128   ;;  %s2932_s0 = smov 8  }
 0x87a   :  { %2083 = dma.vmem_to_hbm [thread:$0]  %s3442_s21, 1024, %s3497_s3, [#allocation4], %s2931_s4, %s2931_s4, %s2932_s0  }
 0x87b   :  { %s2892_s18 = scalar_lea.vmem %s3446_s23, 128  ;;  %p2897_p5 = scmp.lt.s32.totalorder %s3446_s23, %s3446_s23 }
 0x87c   :  { %p2893_p4 = scmp.ne.s32.totalorder %s3446_s23, %s2892_s18  ;;  %p2898_p6 = scmp.lt.s32.totalorder %s2892_s18, %s2892_s18 }
 0x87e   :  { %p2899_p7 = por %p2898_p6, %p2897_p5 }
 0x880   :  { %p2900_p8 = pnand %p2899_p7, %p2893_p4 }
 0x882   :  { %2903 = shalt.err (!%p2900_p8)
}
 0x883   :  { %s2904_s20 = scalar_lea.hbm %s3499_s5, 128 }
 0x884   :  { %p2905_p9 = scmp.ne.s32.totalorder %s3499_s5, %s2904_s20  ;;  %p2908_p10 = scmp.lt.u32.totalorder %s2904_s20, %s3499_s5 }
 0x886   :  { %p2910_p11 = pnand %p2908_p10, %p2905_p9 }
 0x888   :  { %2913 = shalt.err (!%p2910_p11)
}
 0x889   :  { %2103 = dma.vmem_to_hbm [thread:$0]  %s3446_s23, 128, %s3499_s5, [#allocation9]  }
 0x88a   :  { %2918 = dma.done.wait [#allocation4], 1024  }
 0x88b   :  { %2919 = vsyncadd [#allocation4], 4294966272 }
 0x88c   :  { %2920 = dma.done.wait [#allocation9], 256  }
 0x88d   :  { %2921 = vsyncadd [#allocation9], 4294967040 }
 0x88e   :  { %2113 = vsyncpa [#allocation3], 1 }
 0x88f   :  { %2114 = vsyncpa [#allocation6], 1 }
 0x890   :  { %2115 = vsyncpa [#allocation4], 1 }
 0x891   :  { %2116 = vsyncpa [#allocation9], 1 }

</bundles_post_ra>
